<compile_context>
chip_gen: v7x
topology: tpu7x:2x2x1
jax: 0.10.0
libtpu: 0.0.40
codegen_flags: <defaults>
</compile_context>

<pallas_src>
import math

import jax
import jax.numpy as jnp
from jax import lax
from jax.experimental import pallas as pl
from jax.experimental.pallas import tpu as pltpu

# ----------------------------- model config (small, synthetic) ---------------
HIDDEN = 32                     # logical hidden size
NUM_HEADS = 2
HEAD_DIM = HIDDEN // NUM_HEADS
INTERMEDIATE = 64               # logical FFN size
NUM_LAYERS = 2
VOCAB = 128
MAX_POS = 16
LN_EPS = 1e-12                  # BERT LayerNorm eps

# Lane-padded sizes: every VMEM tile's last dim is a whole 128-lane vreg.
HP = 128                        # padded hidden
DP = 128                        # padded per-head dim (each head at a 128-lane boundary)
IP = 128                        # padded intermediate
Q_OFF = 0
K_OFF = NUM_HEADS * DP
V_OFF = 2 * NUM_HEADS * DP
QKV_W = 3 * NUM_HEADS * DP      # 768 packed QKV output lanes

INV_H = 1.0 / HIDDEN


# ----------------------------- in-kernel helpers -----------------------------
def _layernorm_padded(x, g, b):
    """LayerNorm over the first HIDDEN lanes of a lane-padded [S, HP] tile.

    Padded lanes of x are exactly 0, so full-lane sums equal valid-lane sums;
    gamma/beta are zero on padded lanes, so padded lanes stay 0 on output.
    """
    mu = jnp.sum(x, axis=-1, keepdims=True) * INV_H
    ex2 = jnp.sum(x * x, axis=-1, keepdims=True) * INV_H
    var = ex2 - mu * mu
    return (x - mu) * lax.rsqrt(var + LN_EPS) * g + b


def _gelu(x):
    # TODO(synk): HF BERT uses exact erf-based GELU; tanh approximation kept for
    # guaranteed Mosaic lowering (per-activation error < 1e-3).
    c = math.sqrt(2.0 / math.pi)
    return 0.5 * x * (1.0 + jnp.tanh(c * (x + 0.044715 * x * x * x)))


# ----------------------------- fused encoder kernel --------------------------
def fused_encoder_kernel(emb_ref, mask_ref,
                         wqkv_ref, bqkv_ref, wo_ref, bo_ref,
                         ln1g_ref, ln1b_ref,
                         w1_ref, b1_ref, w2_ref, b2_ref,
                         ln2g_ref, ln2b_ref,
                         embg_ref, embb_ref,
                         out_ref):
    layer = pl.program_id(1)

    # Layer 0: fold the embedding LayerNorm in and seed the VMEM-resident
    # residual stream (out block index is constant along the layer axis).
    @pl.when(layer == 0)
    def _():
        out_ref[0] = _layernorm_padded(emb_ref[0], embg_ref[...], embb_ref[...])

    x = out_ref[0]                              # [S, HP] f32 residual (post-LN)
    x_bf = x.astype(jnp.bfloat16)
    mask = mask_ref[0]                          # [1, S] additive key mask

    # ---- fused QKV projection: one MXU push, 768 lane-dense output columns ---
    qkv = jnp.dot(x_bf, wqkv_ref[0], preferred_element_type=jnp.float32) + bqkv_ref[0]

    wo = wo_ref[0]                              # [NH*DP, HP] bf16
    attn = bo_ref[0]                            # start from output bias [1, HP]
    for h in range(NUM_HEADS):                  # static unroll; 128-lane aligned slices
        qh = qkv[:, Q_OFF + h * DP: Q_OFF + (h + 1) * DP]
        kh = qkv[:, K_OFF + h * DP: K_OFF + (h + 1) * DP]
        vh = qkv[:, V_OFF + h * DP: V_OFF + (h + 1) * DP]

        # 1/sqrt(HEAD_DIM) is folded into the packed Q weights/bias at init.
        scores = lax.dot_general(qh.astype(jnp.bfloat16), kh.astype(jnp.bfloat16),
                                 (((1,), (1,)), ((), ())),
                                 preferred_element_type=jnp.float32)   # [S, S]
        scores = scores + mask
        m = jnp.max(scores, axis=-1, keepdims=True)
        e = jnp.exp(scores - m)
        probs = e * pl.reciprocal(jnp.sum(e, axis=-1, keepdims=True), approx=True)

        ctx = jnp.dot(probs.astype(jnp.bfloat16), vh.astype(jnp.bfloat16),
                      preferred_element_type=jnp.float32)              # [S, DP]
        attn = attn + jnp.dot(ctx.astype(jnp.bfloat16),
                              wo[h * DP:(h + 1) * DP, :],
                              preferred_element_type=jnp.float32)      # [S, HP]

    x1 = _layernorm_padded(x + attn, ln1g_ref[0], ln1b_ref[0])

    hmid = _gelu(jnp.dot(x1.astype(jnp.bfloat16), w1_ref[0],
                         preferred_element_type=jnp.float32) + b1_ref[0])
    ffn = jnp.dot(hmid.astype(jnp.bfloat16), w2_ref[0],
                  preferred_element_type=jnp.float32) + b2_ref[0]

    out_ref[0] = _layernorm_padded(x1 + ffn, ln2g_ref[0], ln2b_ref[0])


def fused_encoder_pallas(emb_p, add_mask, p):
    B, S, _ = emb_p.shape
    weights = [p['wqkv'], p['bqkv'], p['wo'], p['bo'],
               p['ln1_g'], p['ln1_b'], p['w1'], p['b1'], p['w2'], p['b2'],
               p['ln2_g'], p['ln2_b']]

    def layer_spec(a):
        # stacked per-layer weight [L, d1, d2], indexed by the layer grid axis
        return pl.BlockSpec((1,) + a.shape[1:], lambda b, l: (l, 0, 0))

    in_specs = (
        [pl.BlockSpec((1, S, HP), lambda b, l: (b, 0, 0)),     # embeddings
         pl.BlockSpec((1, 1, S), lambda b, l: (b, 0, 0))]      # per-batch mask
        + [layer_spec(w) for w in weights]
        + [pl.BlockSpec((1, HP), lambda b, l: (0, 0)),         # emb LN gamma
           pl.BlockSpec((1, HP), lambda b, l: (0, 0))]         # emb LN beta
    )

    return pl.pallas_call(
        fused_encoder_kernel,
        out_shape=jax.ShapeDtypeStruct((B, S, HP), jnp.float32),
        grid=(B, NUM_LAYERS),
        in_specs=in_specs,
        out_specs=pl.BlockSpec((1, S, HP), lambda b, l: (b, 0, 0)),
        compiler_params=pltpu.CompilerParams(
            dimension_semantics=("parallel", "arbitrary")),
    )(emb_p, add_mask, *weights, p['emb_ln_g'], p['emb_ln_b'])


# ----------------------------- params (logical) -------------------------------
def init_params(key):
    std = 0.02
    keys = jax.random.split(key, 3 + NUM_LAYERS)
    params = {
        'word_emb': jax.random.normal(keys[0], (VOCAB, HIDDEN), jnp.float32) * std,
        'pos_emb':  jax.random.normal(keys[1], (MAX_POS, HIDDEN), jnp.float32) * std,
        'type_emb': jax.random.normal(keys[2], (2, HIDDEN), jnp.float32) * std,
        'emb_ln_g': jnp.ones((1, HIDDEN), jnp.float32),
        'emb_ln_b': jnp.zeros((1, HIDDEN), jnp.float32),
        'layers': [],
    }
    for l in range(NUM_LAYERS):
        lk = jax.random.split(keys[3 + l], 6)
        params['layers'].append({
            'wq': jax.random.normal(lk[0], (HIDDEN, HIDDEN), jnp.float32) * std,
            'bq': jnp.zeros((1, HIDDEN), jnp.float32),
            'wk': jax.random.normal(lk[1], (HIDDEN, HIDDEN), jnp.float32) * std,
            'bk': jnp.zeros((1, HIDDEN), jnp.float32),
            'wv': jax.random.normal(lk[2], (HIDDEN, HIDDEN), jnp.float32) * std,
            'bv': jnp.zeros((1, HIDDEN), jnp.float32),
            'wo': jax.random.normal(lk[3], (HIDDEN, HIDDEN), jnp.float32) * std,
            'bo': jnp.zeros((1, HIDDEN), jnp.float32),
            'ln1_g': jnp.ones((1, HIDDEN), jnp.float32),
            'ln1_b': jnp.zeros((1, HIDDEN), jnp.float32),
            'w1': jax.random.normal(lk[4], (HIDDEN, INTERMEDIATE), jnp.float32) * std,
            'b1': jnp.zeros((1, INTERMEDIATE), jnp.float32),
            'w2': jax.random.normal(lk[5], (INTERMEDIATE, HIDDEN), jnp.float32) * std,
            'b2': jnp.zeros((1, HIDDEN), jnp.float32),
            'ln2_g': jnp.ones((1, HIDDEN), jnp.float32),
            'ln2_b': jnp.zeros((1, HIDDEN), jnp.float32),
        })
    return params


# ----------------------------- pack to padded / stacked kernel layout --------
def pack_params(params):
    L = NUM_LAYERS
    scale = 1.0 / math.sqrt(HEAD_DIM)

    wqkv = jnp.zeros((L, HP, QKV_W), jnp.float32)
    bqkv = jnp.zeros((L, 1, QKV_W), jnp.float32)
    wo_p = jnp.zeros((L, NUM_HEADS * DP, HP), jnp.float32)
    bo_p = jnp.zeros((L, 1, HP), jnp.float32)
    ln1g = jnp.zeros((L, 1, HP), jnp.float32)
    ln1b = jnp.zeros((L, 1, HP), jnp.float32)
    w1_p = jnp.zeros((L, HP, IP), jnp.float32)
    b1_p = jnp.zeros((L, 1, IP), jnp.float32)
    w2_p = jnp.zeros((L, IP, HP), jnp.float32)
    b2_p = jnp.zeros((L, 1, HP), jnp.float32)
    ln2g = jnp.zeros((L, 1, HP), jnp.float32)
    ln2b = jnp.zeros((L, 1, HP), jnp.float32)

    for l, lp in enumerate(params['layers']):
        for h in range(NUM_HEADS):
            cols = slice(h * HEAD_DIM, (h + 1) * HEAD_DIM)
            qd = Q_OFF + h * DP
            kd = K_OFF + h * DP
            vd = V_OFF + h * DP
            # 1/sqrt(head_dim) folded into Q weights & bias.
            wqkv = wqkv.at[l, :HIDDEN, qd:qd + HEAD_DIM].set(lp['wq'][:, cols] * scale)
            wqkv = wqkv.at[l, :HIDDEN, kd:kd + HEAD_DIM].set(lp['wk'][:, cols])
            wqkv = wqkv.at[l, :HIDDEN, vd:vd + HEAD_DIM].set(lp['wv'][:, cols])
            bqkv = bqkv.at[l, 0, qd:qd + HEAD_DIM].set(lp['bq'][0, cols] * scale)
            bqkv = bqkv.at[l, 0, kd:kd + HEAD_DIM].set(lp['bk'][0, cols])
            bqkv = bqkv.at[l, 0, vd:vd + HEAD_DIM].set(lp['bv'][0, cols])
            wo_p = wo_p.at[l, h * DP:h * DP + HEAD_DIM, :HIDDEN].set(lp['wo'][cols, :])
        bo_p = bo_p.at[l, 0, :HIDDEN].set(lp['bo'][0])
        ln1g = ln1g.at[l, 0, :HIDDEN].set(lp['ln1_g'][0])
        ln1b = ln1b.at[l, 0, :HIDDEN].set(lp['ln1_b'][0])
        w1_p = w1_p.at[l, :HIDDEN, :INTERMEDIATE].set(lp['w1'])
        b1_p = b1_p.at[l, 0, :INTERMEDIATE].set(lp['b1'][0])
        w2_p = w2_p.at[l, :INTERMEDIATE, :HIDDEN].set(lp['w2'])
        b2_p = b2_p.at[l, 0, :HIDDEN].set(lp['b2'][0])
        ln2g = ln2g.at[l, 0, :HIDDEN].set(lp['ln2_g'][0])
        ln2b = ln2b.at[l, 0, :HIDDEN].set(lp['ln2_b'][0])

    return {
        'word_emb': params['word_emb'],
        'pos_emb': params['pos_emb'],
        'type_emb': params['type_emb'],
        'emb_ln_g': jnp.zeros((1, HP), jnp.float32).at[:, :HIDDEN].set(params['emb_ln_g']),
        'emb_ln_b': jnp.zeros((1, HP), jnp.float32).at[:, :HIDDEN].set(params['emb_ln_b']),
        # matmul operands in bf16 (MXU-native); biases / LN params stay f32.
        'wqkv': wqkv.astype(jnp.bfloat16), 'bqkv': bqkv,
        'wo': wo_p.astype(jnp.bfloat16), 'bo': bo_p,
        'ln1_g': ln1g, 'ln1_b': ln1b,
        'w1': w1_p.astype(jnp.bfloat16), 'b1': b1_p,
        'w2': w2_p.astype(jnp.bfloat16), 'b2': b2_p,
        'ln2_g': ln2g, 'ln2_b': ln2b,
    }


# ----------------------------- forward ---------------------------------------
def clinical_bert_forward(packed, input_ids, attention_mask):
    """Returns the CLS-token hidden state, shape [B, HIDDEN] (== forward() output)."""
    B, S = input_ids.shape
    assert S <= MAX_POS, f"sequence length {S} exceeds MAX_POS={MAX_POS}"

    # Embedding gather + sum (plain JAX; token_type_ids assumed all-zero as in HF default).
    we = packed['word_emb'][input_ids]                    # [B, S, H]
    pe = packed['pos_emb'][:S][None, :, :]                # [1, S, H]
    te = packed['type_emb'][0][None, None, :]             # [1, 1, H]
    emb = (we + pe + te).astype(jnp.float32)
    # Lane-pad hidden to 128 (padded lanes stay exactly 0 through the whole stack).
    emb_p = jnp.zeros((B, S, HP), jnp.float32).at[:, :, :HIDDEN].set(emb)

    # HF-style extended additive attention mask over key positions, [B, 1, S].
    add_mask = ((1.0 - attention_mask.astype(jnp.float32)) * -10000.0)[:, None, :]

    out = fused_encoder_pallas(emb_p, add_mask, packed)   # [B, S, HP]
    return out[:, 0, :HIDDEN]                             # CLS token


# ----------------------------- main ------------------------------------------
if __name__ == "__main__":
    key = jax.random.PRNGKey(0)
    k_param, k_ids = jax.random.split(key)

    params = init_params(k_param)
    packed = pack_params(params)

    B, S = 2, 8
    input_ids = jax.random.randint(k_ids, (B, S), 0, VOCAB, dtype=jnp.int32)
    attention_mask = jnp.array(
        [[1, 1, 1, 1, 1, 1, 1, 1],
         [1, 1, 1, 1, 1, 0, 0, 0]], dtype=jnp.int32)      # second sequence padded

    cls = jax.jit(clinical_bert_forward)(packed, input_ids, attention_mask)
    cls = jax.block_until_ready(cls)

    assert cls.shape == (B, HIDDEN) and cls.dtype == jnp.float32
    assert bool(jnp.all(jnp.isfinite(cls)))
    print("KERNEL_OK")
</pallas_src>

<mosaic_0001>
module attributes {stable_mosaic.version = 11 : i64} {
  func.func @fused_encoder_kernel(%arg0: i32, %arg1: i32, %arg2: memref<1x8x128xf32, #tpu.memory_space<vmem>>, %arg3: memref<1x1x8xf32, #tpu.memory_space<vmem>>, %arg4: memref<1x128x768xbf16, #tpu.memory_space<vmem>>, %arg5: memref<1x1x768xf32, #tpu.memory_space<vmem>>, %arg6: memref<1x256x128xbf16, #tpu.memory_space<vmem>>, %arg7: memref<1x1x128xf32, #tpu.memory_space<vmem>>, %arg8: memref<1x1x128xf32, #tpu.memory_space<vmem>>, %arg9: memref<1x1x128xf32, #tpu.memory_space<vmem>>, %arg10: memref<1x128x128xbf16, #tpu.memory_space<vmem>>, %arg11: memref<1x1x128xf32, #tpu.memory_space<vmem>>, %arg12: memref<1x128x128xbf16, #tpu.memory_space<vmem>>, %arg13: memref<1x1x128xf32, #tpu.memory_space<vmem>>, %arg14: memref<1x1x128xf32, #tpu.memory_space<vmem>>, %arg15: memref<1x1x128xf32, #tpu.memory_space<vmem>>, %arg16: memref<1x128xf32, #tpu.memory_space<vmem>>, %arg17: memref<1x128xf32, #tpu.memory_space<vmem>>, %arg18: memref<1x8x128xf32, #tpu.memory_space<vmem>>) attributes {dimension_semantics = [#tpu.dimension_semantics<parallel>, #tpu.dimension_semantics<arbitrary>], iteration_bounds = array<i64: 2, 2>, scalar_prefetch = 0 : i64, scratch_operands = 0 : i64, tpu.core_type = #tpu.core_type<tc>, window_params = [{transform_indices = @transform_0, window_bounds = array<i64: 1, 8, 128>}, {transform_indices = @transform_1, window_bounds = array<i64: 1, 1, 8>}, {transform_indices = @transform_2, window_bounds = array<i64: 1, 128, 768>}, {transform_indices = @transform_3, window_bounds = array<i64: 1, 1, 768>}, {transform_indices = @transform_4, window_bounds = array<i64: 1, 256, 128>}, {transform_indices = @transform_5, window_bounds = array<i64: 1, 1, 128>}, {transform_indices = @transform_6, window_bounds = array<i64: 1, 1, 128>}, {transform_indices = @transform_7, window_bounds = array<i64: 1, 1, 128>}, {transform_indices = @transform_8, window_bounds = array<i64: 1, 128, 128>}, {transform_indices = @transform_9, window_bounds = array<i64: 1, 1, 128>}, {transform_indices = @transform_10, window_bounds = array<i64: 1, 128, 128>}, {transform_indices = @transform_11, window_bounds = array<i64: 1, 1, 128>}, {transform_indices = @transform_12, window_bounds = array<i64: 1, 1, 128>}, {transform_indices = @transform_13, window_bounds = array<i64: 1, 1, 128>}, {pipeline_mode = #tpu.pipeline_mode<synchronous>, transform_indices = @transform_14, window_bounds = array<i64: 1, 128>}, {pipeline_mode = #tpu.pipeline_mode<synchronous>, transform_indices = @transform_15, window_bounds = array<i64: 1, 128>}, {transform_indices = @transform_16, window_bounds = array<i64: 1, 8, 128>}]} {
    %c0_i32 = arith.constant 0 : i32
    %0 = arith.cmpi eq, %arg1, %c0_i32 : i32
    %1 = arith.extui %0 : i1 to i32
    %c0_i32_0 = arith.constant 0 : i32
    %2 = arith.cmpi ne, %1, %c0_i32_0 : i32
    scf.if %2 {
      %c0_71 = arith.constant 0 : index
      %c0_72 = arith.constant 0 : index
      %c0_73 = arith.constant 0 : index
      %156 = vector.load %arg2[%c0_71, %c0_72, %c0_73] : memref<1x8x128xf32, #tpu.memory_space<vmem>>, vector<1x8x128xf32>
      %157 = vector.shape_cast %156 : vector<1x8x128xf32> to vector<8x128xf32>
      %c0_74 = arith.constant 0 : index
      %c0_75 = arith.constant 0 : index
      %158 = vector.load %arg16[%c0_74, %c0_75] : memref<1x128xf32, #tpu.memory_space<vmem>>, vector<1x128xf32>
      %c0_76 = arith.constant 0 : index
      %c0_77 = arith.constant 0 : index
      %159 = vector.load %arg17[%c0_76, %c0_77] : memref<1x128xf32, #tpu.memory_space<vmem>>, vector<1x128xf32>
      %cst_78 = arith.constant dense<0.000000e+00> : vector<8xf32>
      %160 = vector.multi_reduction <add>, %157, %cst_78 [1] : vector<8x128xf32> to vector<8xf32>
      %161 = vector.shape_cast %160 : vector<8xf32> to vector<8x1xf32>
      %cst_79 = arith.constant 3.125000e-02 : f32
      %162 = vector.broadcast %cst_79 : f32 to vector<8x1xf32>
      %163 = arith.mulf %161, %162 : vector<8x1xf32>
      %164 = arith.mulf %157, %157 : vector<8x128xf32>
      %cst_80 = arith.constant dense<0.000000e+00> : vector<8xf32>
      %165 = vector.multi_reduction <add>, %164, %cst_80 [1] : vector<8x128xf32> to vector<8xf32>
      %166 = vector.shape_cast %165 : vector<8xf32> to vector<8x1xf32>
      %cst_81 = arith.constant 3.125000e-02 : f32
      %167 = vector.broadcast %cst_81 : f32 to vector<8x1xf32>
      %168 = arith.mulf %166, %167 : vector<8x1xf32>
      %169 = arith.mulf %163, %163 : vector<8x1xf32>
      %170 = arith.subf %168, %169 : vector<8x1xf32>
      %171 = vector.broadcast %163 : vector<8x1xf32> to vector<8x128xf32>
      %172 = arith.subf %157, %171 : vector<8x128xf32>
      %cst_82 = arith.constant 9.99999996E-13 : f32
      %173 = vector.broadcast %cst_82 : f32 to vector<8x1xf32>
      %174 = arith.addf %170, %173 : vector<8x1xf32>
      %175 = math.rsqrt %174 : vector<8x1xf32>
      %176 = vector.broadcast %175 : vector<8x1xf32> to vector<8x128xf32>
      %177 = arith.mulf %172, %176 : vector<8x128xf32>
      %178 = vector.broadcast %158 : vector<1x128xf32> to vector<8x128xf32>
      %179 = arith.mulf %177, %178 : vector<8x128xf32>
      %180 = vector.broadcast %159 : vector<1x128xf32> to vector<8x128xf32>
      %181 = arith.addf %179, %180 : vector<8x128xf32>
      %c0_83 = arith.constant 0 : index
      %c0_84 = arith.constant 0 : index
      %c0_85 = arith.constant 0 : index
      %182 = vector.load %arg18[%c0_83, %c0_84, %c0_85] : memref<1x8x128xf32, #tpu.memory_space<vmem>>, vector<1x8x128xf32>
      %183 = vector.shape_cast %182 : vector<1x8x128xf32> to vector<8x128xf32>
      %184 = vector.shape_cast %181 : vector<8x128xf32> to vector<1x8x128xf32>
      tpu.vector_store %arg18[%c0_83, %c0_84, %c0_85], %184 {strides = array<i32>} : memref<1x8x128xf32, #tpu.memory_space<vmem>>, vector<1x8x128xf32>,
    } else {
    }
    %c0 = arith.constant 0 : index
    %c0_1 = arith.constant 0 : index
    %c0_2 = arith.constant 0 : index
    %3 = vector.load %arg18[%c0, %c0_1, %c0_2] : memref<1x8x128xf32, #tpu.memory_space<vmem>>, vector<1x8x128xf32>
    %4 = vector.shape_cast %3 : vector<1x8x128xf32> to vector<8x128xf32>
    %5 = arith.truncf %4 : vector<8x128xf32> to vector<8x128xbf16>
    %c0_3 = arith.constant 0 : index
    %c0_4 = arith.constant 0 : index
    %c0_5 = arith.constant 0 : index
    %6 = vector.load %arg3[%c0_3, %c0_4, %c0_5] : memref<1x1x8xf32, #tpu.memory_space<vmem>>, vector<1x1x8xf32>
    %7 = vector.shape_cast %6 : vector<1x1x8xf32> to vector<1x8xf32>
    %c0_6 = arith.constant 0 : index
    %c0_7 = arith.constant 0 : index
    %c0_8 = arith.constant 0 : index
    %8 = vector.load %arg4[%c0_6, %c0_7, %c0_8] : memref<1x128x768xbf16, #tpu.memory_space<vmem>>, vector<1x128x768xbf16>
    %9 = vector.shape_cast %8 : vector<1x128x768xbf16> to vector<128x768xbf16>
    %cst = arith.constant dense<0.000000e+00> : vector<8x768xf32>
    %10 = tpu.matmul %5, %9, %cst {dimension_numbers = #tpu.dot_dimension_numbers<[1], [0], [0], [1], [0, 0, 1, 1], [], []>} : vector<8x128xbf16>, vector<128x768xbf16>, vector<8x768xf32> -> vector<8x768xf32>
    %c0_9 = arith.constant 0 : index
    %c0_10 = arith.constant 0 : index
    %c0_11 = arith.constant 0 : index
    %11 = vector.load %arg5[%c0_9, %c0_10, %c0_11] : memref<1x1x768xf32, #tpu.memory_space<vmem>>, vector<1x1x768xf32>
    %12 = vector.shape_cast %11 : vector<1x1x768xf32> to vector<1x768xf32>
    %13 = vector.broadcast %12 : vector<1x768xf32> to vector<8x768xf32>
    %14 = arith.addf %10, %13 : vector<8x768xf32>
    %c0_12 = arith.constant 0 : index
    %c0_13 = arith.constant 0 : index
    %c0_14 = arith.constant 0 : index
    %15 = vector.load %arg6[%c0_12, %c0_13, %c0_14] : memref<1x256x128xbf16, #tpu.memory_space<vmem>>, vector<1x256x128xbf16>
    %16 = vector.shape_cast %15 : vector<1x256x128xbf16> to vector<256x128xbf16>
    %c0_15 = arith.constant 0 : index
    %c0_16 = arith.constant 0 : index
    %c0_17 = arith.constant 0 : index
    %17 = vector.load %arg7[%c0_15, %c0_16, %c0_17] : memref<1x1x128xf32, #tpu.memory_space<vmem>>, vector<1x1x128xf32>
    %18 = vector.shape_cast %17 : vector<1x1x128xf32> to vector<1x128xf32>
    %19 = vector.extract_strided_slice %14 {offsets = [0, 0], sizes = [8, 128], strides = [1, 1]} : vector<8x768xf32> to vector<8x128xf32>
    %20 = vector.extract_strided_slice %14 {offsets = [0, 256], sizes = [8, 128], strides = [1, 1]} : vector<8x768xf32> to vector<8x128xf32>
    %21 = vector.extract_strided_slice %14 {offsets = [0, 512], sizes = [8, 128], strides = [1, 1]} : vector<8x768xf32> to vector<8x128xf32>
    %22 = arith.truncf %19 : vector<8x128xf32> to vector<8x128xbf16>
    %23 = arith.truncf %20 : vector<8x128xf32> to vector<8x128xbf16>
    %cst_18 = arith.constant dense<0.000000e+00> : vector<8x8xf32>
    %24 = tpu.matmul %22, %23, %cst_18 {dimension_numbers = #tpu.dot_dimension_numbers<[1], [1], [0], [0], [0, 0, 1, 0], [], []>} : vector<8x128xbf16>, vector<8x128xbf16>, vector<8x8xf32> -> vector<8x8xf32>
    %25 = vector.broadcast %7 : vector<1x8xf32> to vector<8x8xf32>
    %26 = arith.addf %24, %25 : vector<8x8xf32>
    %cst_19 = arith.constant dense<0xFF800000> : vector<8xf32>
    %27 = vector.multi_reduction <maximumf>, %26, %cst_19 [1] : vector<8x8xf32> to vector<8xf32>
    %28 = vector.shape_cast %27 : vector<8xf32> to vector<8x1xf32>
    %29 = vector.broadcast %28 : vector<8x1xf32> to vector<8x8xf32>
    %30 = arith.subf %26, %29 : vector<8x8xf32>
    %31 = math.exp %30 : vector<8x8xf32>
    %cst_20 = arith.constant dense<0.000000e+00> : vector<8xf32>
    %32 = vector.multi_reduction <add>, %31, %cst_20 [1] : vector<8x8xf32> to vector<8xf32>
    %33 = vector.shape_cast %32 : vector<8xf32> to vector<8x1xf32>
    %34 = tpu.reciprocal %33 {approx = true} : vector<8x1xf32> -> vector<8x1xf32>
    %35 = vector.broadcast %34 : vector<8x1xf32> to vector<8x8xf32>
    %36 = arith.mulf %31, %35 : vector<8x8xf32>
    %37 = arith.truncf %36 : vector<8x8xf32> to vector<8x8xbf16>
    %38 = arith.truncf %21 : vector<8x128xf32> to vector<8x128xbf16>
    %cst_21 = arith.constant dense<0.000000e+00> : vector<8x128xf32>
    %39 = tpu.matmul %37, %38, %cst_21 {dimension_numbers = #tpu.dot_dimension_numbers<[1], [0], [0], [1], [0, 0, 1, 1], [], []>} : vector<8x8xbf16>, vector<8x128xbf16>, vector<8x128xf32> -> vector<8x128xf32>
    %40 = arith.truncf %39 : vector<8x128xf32> to vector<8x128xbf16>
    %41 = vector.extract_strided_slice %16 {offsets = [0, 0], sizes = [128, 128], strides = [1, 1]} : vector<256x128xbf16> to vector<128x128xbf16>
    %cst_22 = arith.constant dense<0.000000e+00> : vector<8x128xf32>
    %42 = tpu.matmul %40, %41, %cst_22 {dimension_numbers = #tpu.dot_dimension_numbers<[1], [0], [0], [1], [0, 0, 1, 1], [], []>} : vector<8x128xbf16>, vector<128x128xbf16>, vector<8x128xf32> -> vector<8x128xf32>
    %43 = vector.broadcast %18 : vector<1x128xf32> to vector<8x128xf32>
    %44 = arith.addf %43, %42 : vector<8x128xf32>
    %45 = vector.extract_strided_slice %14 {offsets = [0, 128], sizes = [8, 128], strides = [1, 1]} : vector<8x768xf32> to vector<8x128xf32>
    %46 = vector.extract_strided_slice %14 {offsets = [0, 384], sizes = [8, 128], strides = [1, 1]} : vector<8x768xf32> to vector<8x128xf32>
    %47 = vector.extract_strided_slice %14 {offsets = [0, 640], sizes = [8, 128], strides = [1, 1]} : vector<8x768xf32> to vector<8x128xf32>
    %48 = arith.truncf %45 : vector<8x128xf32> to vector<8x128xbf16>
    %49 = arith.truncf %46 : vector<8x128xf32> to vector<8x128xbf16>
    %cst_23 = arith.constant dense<0.000000e+00> : vector<8x8xf32>
    %50 = tpu.matmul %48, %49, %cst_23 {dimension_numbers = #tpu.dot_dimension_numbers<[1], [1], [0], [0], [0, 0, 1, 0], [], []>} : vector<8x128xbf16>, vector<8x128xbf16>, vector<8x8xf32> -> vector<8x8xf32>
    %51 = vector.broadcast %7 : vector<1x8xf32> to vector<8x8xf32>
    %52 = arith.addf %50, %51 : vector<8x8xf32>
    %cst_24 = arith.constant dense<0xFF800000> : vector<8xf32>
    %53 = vector.multi_reduction <maximumf>, %52, %cst_24 [1] : vector<8x8xf32> to vector<8xf32>
    %54 = vector.shape_cast %53 : vector<8xf32> to vector<8x1xf32>
    %55 = vector.broadcast %54 : vector<8x1xf32> to vector<8x8xf32>
    %56 = arith.subf %52, %55 : vector<8x8xf32>
    %57 = math.exp %56 : vector<8x8xf32>
    %cst_25 = arith.constant dense<0.000000e+00> : vector<8xf32>
    %58 = vector.multi_reduction <add>, %57, %cst_25 [1] : vector<8x8xf32> to vector<8xf32>
    %59 = vector.shape_cast %58 : vector<8xf32> to vector<8x1xf32>
    %60 = tpu.reciprocal %59 {approx = true} : vector<8x1xf32> -> vector<8x1xf32>
    %61 = vector.broadcast %60 : vector<8x1xf32> to vector<8x8xf32>
    %62 = arith.mulf %57, %61 : vector<8x8xf32>
    %63 = arith.truncf %62 : vector<8x8xf32> to vector<8x8xbf16>
    %64 = arith.truncf %47 : vector<8x128xf32> to vector<8x128xbf16>
    %cst_26 = arith.constant dense<0.000000e+00> : vector<8x128xf32>
    %65 = tpu.matmul %63, %64, %cst_26 {dimension_numbers = #tpu.dot_dimension_numbers<[1], [0], [0], [1], [0, 0, 1, 1], [], []>} : vector<8x8xbf16>, vector<8x128xbf16>, vector<8x128xf32> -> vector<8x128xf32>
    %66 = arith.truncf %65 : vector<8x128xf32> to vector<8x128xbf16>
    %67 = vector.extract_strided_slice %16 {offsets = [128, 0], sizes = [128, 128], strides = [1, 1]} : vector<256x128xbf16> to vector<128x128xbf16>
    %cst_27 = arith.constant dense<0.000000e+00> : vector<8x128xf32>
    %68 = tpu.matmul %66, %67, %cst_27 {dimension_numbers = #tpu.dot_dimension_numbers<[1], [0], [0], [1], [0, 0, 1, 1], [], []>} : vector<8x128xbf16>, vector<128x128xbf16>, vector<8x128xf32> -> vector<8x128xf32>
    %69 = arith.addf %44, %68 : vector<8x128xf32>
    %70 = arith.addf %4, %69 : vector<8x128xf32>
    %c0_28 = arith.constant 0 : index
    %c0_29 = arith.constant 0 : index
    %c0_30 = arith.constant 0 : index
    %71 = vector.load %arg8[%c0_28, %c0_29, %c0_30] : memref<1x1x128xf32, #tpu.memory_space<vmem>>, vector<1x1x128xf32>
    %72 = vector.shape_cast %71 : vector<1x1x128xf32> to vector<1x128xf32>
    %c0_31 = arith.constant 0 : index
    %c0_32 = arith.constant 0 : index
    %c0_33 = arith.constant 0 : index
    %73 = vector.load %arg9[%c0_31, %c0_32, %c0_33] : memref<1x1x128xf32, #tpu.memory_space<vmem>>, vector<1x1x128xf32>
    %74 = vector.shape_cast %73 : vector<1x1x128xf32> to vector<1x128xf32>
    %cst_34 = arith.constant dense<0.000000e+00> : vector<8xf32>
    %75 = vector.multi_reduction <add>, %70, %cst_34 [1] : vector<8x128xf32> to vector<8xf32>
    %76 = vector.shape_cast %75 : vector<8xf32> to vector<8x1xf32>
    %cst_35 = arith.constant 3.125000e-02 : f32
    %77 = vector.broadcast %cst_35 : f32 to vector<8x1xf32>
    %78 = arith.mulf %76, %77 : vector<8x1xf32>
    %79 = arith.mulf %70, %70 : vector<8x128xf32>
    %cst_36 = arith.constant dense<0.000000e+00> : vector<8xf32>
    %80 = vector.multi_reduction <add>, %79, %cst_36 [1] : vector<8x128xf32> to vector<8xf32>
    %81 = vector.shape_cast %80 : vector<8xf32> to vector<8x1xf32>
    %cst_37 = arith.constant 3.125000e-02 : f32
    %82 = vector.broadcast %cst_37 : f32 to vector<8x1xf32>
    %83 = arith.mulf %81, %82 : vector<8x1xf32>
    %84 = arith.mulf %78, %78 : vector<8x1xf32>
    %85 = arith.subf %83, %84 : vector<8x1xf32>
    %86 = vector.broadcast %78 : vector<8x1xf32> to vector<8x128xf32>
    %87 = arith.subf %70, %86 : vector<8x128xf32>
    %cst_38 = arith.constant 9.99999996E-13 : f32
    %88 = vector.broadcast %cst_38 : f32 to vector<8x1xf32>
    %89 = arith.addf %85, %88 : vector<8x1xf32>
    %90 = math.rsqrt %89 : vector<8x1xf32>
    %91 = vector.broadcast %90 : vector<8x1xf32> to vector<8x128xf32>
    %92 = arith.mulf %87, %91 : vector<8x128xf32>
    %93 = vector.broadcast %72 : vector<1x128xf32> to vector<8x128xf32>
    %94 = arith.mulf %92, %93 : vector<8x128xf32>
    %95 = vector.broadcast %74 : vector<1x128xf32> to vector<8x128xf32>
    %96 = arith.addf %94, %95 : vector<8x128xf32>
    %97 = arith.truncf %96 : vector<8x128xf32> to vector<8x128xbf16>
    %c0_39 = arith.constant 0 : index
    %c0_40 = arith.constant 0 : index
    %c0_41 = arith.constant 0 : index
    %98 = vector.load %arg10[%c0_39, %c0_40, %c0_41] : memref<1x128x128xbf16, #tpu.memory_space<vmem>>, vector<1x128x128xbf16>
    %99 = vector.shape_cast %98 : vector<1x128x128xbf16> to vector<128x128xbf16>
    %cst_42 = arith.constant dense<0.000000e+00> : vector<8x128xf32>
    %100 = tpu.matmul %97, %99, %cst_42 {dimension_numbers = #tpu.dot_dimension_numbers<[1], [0], [0], [1], [0, 0, 1, 1], [], []>} : vector<8x128xbf16>, vector<128x128xbf16>, vector<8x128xf32> -> vector<8x128xf32>
    %c0_43 = arith.constant 0 : index
    %c0_44 = arith.constant 0 : index
    %c0_45 = arith.constant 0 : index
    %101 = vector.load %arg11[%c0_43, %c0_44, %c0_45] : memref<1x1x128xf32, #tpu.memory_space<vmem>>, vector<1x1x128xf32>
    %102 = vector.shape_cast %101 : vector<1x1x128xf32> to vector<1x128xf32>
    %103 = vector.broadcast %102 : vector<1x128xf32> to vector<8x128xf32>
    %104 = arith.addf %100, %103 : vector<8x128xf32>
    %cst_46 = arith.constant 5.000000e-01 : f32
    %105 = vector.broadcast %cst_46 : f32 to vector<8x128xf32>
    %106 = arith.mulf %105, %104 : vector<8x128xf32>
    %cst_47 = arith.constant 4.471500e-02 : f32
    %107 = vector.broadcast %cst_47 : f32 to vector<8x128xf32>
    %108 = arith.mulf %107, %104 : vector<8x128xf32>
    %109 = arith.mulf %108, %104 : vector<8x128xf32>
    %110 = arith.mulf %109, %104 : vector<8x128xf32>
    %111 = arith.addf %104, %110 : vector<8x128xf32>
    %cst_48 = arith.constant 0.797884583 : f32
    %112 = vector.broadcast %cst_48 : f32 to vector<8x128xf32>
    %113 = arith.mulf %112, %111 : vector<8x128xf32>
    %114 = math.tanh %113 : vector<8x128xf32>
    %cst_49 = arith.constant 1.000000e+00 : f32
    %115 = vector.broadcast %cst_49 : f32 to vector<8x128xf32>
    %116 = arith.addf %115, %114 : vector<8x128xf32>
    %117 = arith.mulf %106, %116 : vector<8x128xf32>
    %118 = arith.truncf %117 : vector<8x128xf32> to vector<8x128xbf16>
    %c0_50 = arith.constant 0 : index
    %c0_51 = arith.constant 0 : index
    %c0_52 = arith.constant 0 : index
    %119 = vector.load %arg12[%c0_50, %c0_51, %c0_52] : memref<1x128x128xbf16, #tpu.memory_space<vmem>>, vector<1x128x128xbf16>
    %120 = vector.shape_cast %119 : vector<1x128x128xbf16> to vector<128x128xbf16>
    %cst_53 = arith.constant dense<0.000000e+00> : vector<8x128xf32>
    %121 = tpu.matmul %118, %120, %cst_53 {dimension_numbers = #tpu.dot_dimension_numbers<[1], [0], [0], [1], [0, 0, 1, 1], [], []>} : vector<8x128xbf16>, vector<128x128xbf16>, vector<8x128xf32> -> vector<8x128xf32>
    %c0_54 = arith.constant 0 : index
    %c0_55 = arith.constant 0 : index
    %c0_56 = arith.constant 0 : index
    %122 = vector.load %arg13[%c0_54, %c0_55, %c0_56] : memref<1x1x128xf32, #tpu.memory_space<vmem>>, vector<1x1x128xf32>
    %123 = vector.shape_cast %122 : vector<1x1x128xf32> to vector<1x128xf32>
    %124 = vector.broadcast %123 : vector<1x128xf32> to vector<8x128xf32>
    %125 = arith.addf %121, %124 : vector<8x128xf32>
    %126 = arith.addf %96, %125 : vector<8x128xf32>
    %c0_57 = arith.constant 0 : index
    %c0_58 = arith.constant 0 : index
    %c0_59 = arith.constant 0 : index
    %127 = vector.load %arg14[%c0_57, %c0_58, %c0_59] : memref<1x1x128xf32, #tpu.memory_space<vmem>>, vector<1x1x128xf32>
    %128 = vector.shape_cast %127 : vector<1x1x128xf32> to vector<1x128xf32>
    %c0_60 = arith.constant 0 : index
    %c0_61 = arith.constant 0 : index
    %c0_62 = arith.constant 0 : index
    %129 = vector.load %arg15[%c0_60, %c0_61, %c0_62] : memref<1x1x128xf32, #tpu.memory_space<vmem>>, vector<1x1x128xf32>
    %130 = vector.shape_cast %129 : vector<1x1x128xf32> to vector<1x128xf32>
    %cst_63 = arith.constant dense<0.000000e+00> : vector<8xf32>
    %131 = vector.multi_reduction <add>, %126, %cst_63 [1] : vector<8x128xf32> to vector<8xf32>
    %132 = vector.shape_cast %131 : vector<8xf32> to vector<8x1xf32>
    %cst_64 = arith.constant 3.125000e-02 : f32
    %133 = vector.broadcast %cst_64 : f32 to vector<8x1xf32>
    %134 = arith.mulf %132, %133 : vector<8x1xf32>
    %135 = arith.mulf %126, %126 : vector<8x128xf32>
    %cst_65 = arith.constant dense<0.000000e+00> : vector<8xf32>
    %136 = vector.multi_reduction <add>, %135, %cst_65 [1] : vector<8x128xf32> to vector<8xf32>
    %137 = vector.shape_cast %136 : vector<8xf32> to vector<8x1xf32>
    %cst_66 = arith.constant 3.125000e-02 : f32
    %138 = vector.broadcast %cst_66 : f32 to vector<8x1xf32>
    %139 = arith.mulf %137, %138 : vector<8x1xf32>
    %140 = arith.mulf %134, %134 : vector<8x1xf32>
    %141 = arith.subf %139, %140 : vector<8x1xf32>
    %142 = vector.broadcast %134 : vector<8x1xf32> to vector<8x128xf32>
    %143 = arith.subf %126, %142 : vector<8x128xf32>
    %cst_67 = arith.constant 9.99999996E-13 : f32
    %144 = vector.broadcast %cst_67 : f32 to vector<8x1xf32>
    %145 = arith.addf %141, %144 : vector<8x1xf32>
    %146 = math.rsqrt %145 : vector<8x1xf32>
    %147 = vector.broadcast %146 : vector<8x1xf32> to vector<8x128xf32>
    %148 = arith.mulf %143, %147 : vector<8x128xf32>
    %149 = vector.broadcast %128 : vector<1x128xf32> to vector<8x128xf32>
    %150 = arith.mulf %148, %149 : vector<8x128xf32>
    %151 = vector.broadcast %130 : vector<1x128xf32> to vector<8x128xf32>
    %152 = arith.addf %150, %151 : vector<8x128xf32>
    %c0_68 = arith.constant 0 : index
    %c0_69 = arith.constant 0 : index
    %c0_70 = arith.constant 0 : index
    %153 = vector.load %arg18[%c0_68, %c0_69, %c0_70] : memref<1x8x128xf32, #tpu.memory_space<vmem>>, vector<1x8x128xf32>
    %154 = vector.shape_cast %153 : vector<1x8x128xf32> to vector<8x128xf32>
    %155 = vector.shape_cast %152 : vector<8x128xf32> to vector<1x8x128xf32>
    tpu.vector_store %arg18[%c0_68, %c0_69, %c0_70], %155 {strides = array<i32>} : memref<1x8x128xf32, #tpu.memory_space<vmem>>, vector<1x8x128xf32>,
    return
  }
  func.func @transform_0(%arg0: i32, %arg1: i32) -> (i32, i32, i32) {
    %c0_i32 = arith.constant 0 : i32
    %c0_i32_0 = arith.constant 0 : i32
    %c0_i32_1 = arith.constant 0 : i32
    return %arg0, %c0_i32, %c0_i32_0 : i32, i32, i32
  }
  func.func @transform_1(%arg0: i32, %arg1: i32) -> (i32, i32, i32) {
    %c0_i32 = arith.constant 0 : i32
    %c0_i32_0 = arith.constant 0 : i32
    %c0_i32_1 = arith.constant 0 : i32
    return %arg0, %c0_i32, %c0_i32_0 : i32, i32, i32
  }
  func.func @transform_2(%arg0: i32, %arg1: i32) -> (i32, i32, i32) {
    %c0_i32 = arith.constant 0 : i32
    %c0_i32_0 = arith.constant 0 : i32
    %c0_i32_1 = arith.constant 0 : i32
    return %arg1, %c0_i32, %c0_i32_0 : i32, i32, i32
  }
  func.func @transform_3(%arg0: i32, %arg1: i32) -> (i32, i32, i32) {
    %c0_i32 = arith.constant 0 : i32
    %c0_i32_0 = arith.constant 0 : i32
    %c0_i32_1 = arith.constant 0 : i32
    return %arg1, %c0_i32, %c0_i32_0 : i32, i32, i32
  }
  func.func @transform_4(%arg0: i32, %arg1: i32) -> (i32, i32, i32) {
    %c0_i32 = arith.constant 0 : i32
    %c0_i32_0 = arith.constant 0 : i32
    %c0_i32_1 = arith.constant 0 : i32
    return %arg1, %c0_i32, %c0_i32_0 : i32, i32, i32
  }
  func.func @transform_5(%arg0: i32, %arg1: i32) -> (i32, i32, i32) {
    %c0_i32 = arith.constant 0 : i32
    %c0_i32_0 = arith.constant 0 : i32
    %c0_i32_1 = arith.constant 0 : i32
    return %arg1, %c0_i32, %c0_i32_0 : i32, i32, i32
  }
  func.func @transform_6(%arg0: i32, %arg1: i32) -> (i32, i32, i32) {
    %c0_i32 = arith.constant 0 : i32
    %c0_i32_0 = arith.constant 0 : i32
    %c0_i32_1 = arith.constant 0 : i32
    return %arg1, %c0_i32, %c0_i32_0 : i32, i32, i32
  }
  func.func @transform_7(%arg0: i32, %arg1: i32) -> (i32, i32, i32) {
    %c0_i32 = arith.constant 0 : i32
    %c0_i32_0 = arith.constant 0 : i32
    %c0_i32_1 = arith.constant 0 : i32
    return %arg1, %c0_i32, %c0_i32_0 : i32, i32, i32
  }
  func.func @transform_8(%arg0: i32, %arg1: i32) -> (i32, i32, i32) {
    %c0_i32 = arith.constant 0 : i32
    %c0_i32_0 = arith.constant 0 : i32
    %c0_i32_1 = arith.constant 0 : i32
    return %arg1, %c0_i32, %c0_i32_0 : i32, i32, i32
  }
  func.func @transform_9(%arg0: i32, %arg1: i32) -> (i32, i32, i32) {
    %c0_i32 = arith.constant 0 : i32
    %c0_i32_0 = arith.constant 0 : i32
    %c0_i32_1 = arith.constant 0 : i32
    return %arg1, %c0_i32, %c0_i32_0 : i32, i32, i32
  }
  func.func @transform_10(%arg0: i32, %arg1: i32) -> (i32, i32, i32) {
    %c0_i32 = arith.constant 0 : i32
    %c0_i32_0 = arith.constant 0 : i32
    %c0_i32_1 = arith.constant 0 : i32
    return %arg1, %c0_i32, %c0_i32_0 : i32, i32, i32
  }
  func.func @transform_11(%arg0: i32, %arg1: i32) -> (i32, i32, i32) {
    %c0_i32 = arith.constant 0 : i32
    %c0_i32_0 = arith.constant 0 : i32
    %c0_i32_1 = arith.constant 0 : i32
    return %arg1, %c0_i32, %c0_i32_0 : i32, i32, i32
  }
  func.func @transform_12(%arg0: i32, %arg1: i32) -> (i32, i32, i32) {
    %c0_i32 = arith.constant 0 : i32
    %c0_i32_0 = arith.constant 0 : i32
    %c0_i32_1 = arith.constant 0 : i32
    return %arg1, %c0_i32, %c0_i32_0 : i32, i32, i32
  }
  func.func @transform_13(%arg0: i32, %arg1: i32) -> (i32, i32, i32) {
    %c0_i32 = arith.constant 0 : i32
    %c0_i32_0 = arith.constant 0 : i32
    %c0_i32_1 = arith.constant 0 : i32
    return %arg1, %c0_i32, %c0_i32_0 : i32, i32, i32
  }
  func.func @transform_14(%arg0: i32, %arg1: i32) -> (i32, i32) {
    %c0_i32 = arith.constant 0 : i32
    %c0_i32_0 = arith.constant 0 : i32
    %c0_i32_1 = arith.constant 0 : i32
    return %c0_i32, %c0_i32_0 : i32, i32
  }
  func.func @transform_15(%arg0: i32, %arg1: i32) -> (i32, i32) {
    %c0_i32 = arith.constant 0 : i32
    %c0_i32_0 = arith.constant 0 : i32
    %c0_i32_1 = arith.constant 0 : i32
    return %c0_i32, %c0_i32_0 : i32, i32
  }
  func.func @transform_16(%arg0: i32, %arg1: i32) -> (i32, i32, i32) {
    %c0_i32 = arith.constant 0 : i32
    %c0_i32_0 = arith.constant 0 : i32
    %c0_i32_1 = arith.constant 0 : i32
    return %arg0, %c0_i32, %c0_i32_0 : i32, i32, i32
  }
}

</mosaic_0001>

<bundles_post_ra>
// kernel: clinical_bert_forward.1
= control target key start
LH: loop header
LB: loop body
LE: loop exit
PB: predicated region body
PF: predicated region fallthrough
CT: control target
= control target key end

     0   :  { %s3379_s0 = inlined_call_operand.vmem [shape: f32[2,8,128], index: 0, kind: input, shape index: {}]   ;;  %s3380_s1 = inlined_call_operand.vmem [shape: f32[2,1,8], index: 1, kind: input, shape index: {}]   ;;  %s3381_s2 = inlined_call_operand.hbm [shape: bf16[2,128,768], index: 2, kind: input, shape index: {}]   ;;  %s3382_s3 = inlined_call_operand.vmem [shape: f32[2,1,768], index: 3, kind: input, shape index: {}]   ;;  %s3383_s4 = inlined_call_operand.vmem [shape: bf16[2,256,128], index: 4, kind: input, shape index: {}]   ;;  %s3384_s5 = inlined_call_operand.vmem [shape: f32[2,1,128], index: 5, kind: input, shape index: {}]   ;;  %s3385_s6 = inlined_call_operand.vmem [shape: f32[2,1,128], index: 6, kind: input, shape index: {}]   ;;  %s3386_s7 = inlined_call_operand.vmem [shape: f32[2,1,128], index: 7, kind: input, shape index: {}]   ;;  %s3387_s8 = inlined_call_operand.vmem [shape: bf16[2,128,128], index: 8, kind: input, shape index: {}]   ;;  %s3388_s9 = inlined_call_operand.vmem [shape: f32[2,1,128], index: 9, kind: input, shape index: {}]   ;;  %s3389_s10 = inlined_call_operand.hbm [shape: bf16[2,128,128], index: 10, kind: input, shape index: {}]   ;;  %s3390_s11 = inlined_call_operand.vmem [shape: f32[2,1,128], index: 11, kind: input, shape index: {}]   ;;  %s3391_s12 = inlined_call_operand.vmem [shape: f32[2,1,128], index: 12, kind: input, shape index: {}]   ;;  %s3392_s13 = inlined_call_operand.vmem [shape: f32[2,1,128], index: 13, kind: input, shape index: {}]   ;;  %s3393_s14 = inlined_call_operand.vmem [shape: f32[1,128], index: 14, kind: input, shape index: {}]   ;;  %s3394_s15 = inlined_call_operand.vmem [shape: f32[1,128], index: 15, kind: input, shape index: {}]   ;;  %s3395_s16 = inlined_call_operand.vmem [shape: f32[2,8,128], index: 16, kind: output, shape index: {}]  }
   0x1   :  { %3404 = sst [smem:[#allocation17_spill]] %s3379_s0 }
   0x2   :  { %3405 = sst [smem:[#allocation18_spill]] %s3380_s1 }
   0x3   :  { %3406 = sst [smem:[#allocation19_spill]] %s3381_s2 }
   0x4   :  { %3407 = sst [smem:[#allocation20_spill]] %s3382_s3 }
   0x5   :  { %3408 = sst [smem:[#allocation21_spill]] %s3383_s4 }
   0x6   :  { %3409 = sst [smem:[#allocation22_spill]] %s3385_s6 }
   0x7   :  { %3410 = sst [smem:[#allocation23_spill]] %s3386_s7 }
   0x8   :  { %3411 = sst [smem:[#allocation24_spill]] %s3389_s10 }
   0x9   :  { %3412 = sst [smem:[#allocation25_spill]] %s3391_s12 }
   0xa   :  { %3413 = sst [smem:[#allocation26_spill]] %s3392_s13 }
   0xb   :  { %3414 = sst [smem:[#allocation27_spill]] %s3393_s14 }
   0xc   :  { %3415 = sst [smem:[#allocation28_spill]] %s3394_s15 }
   0xd   :  { %3416 = sst [smem:[#allocation29_spill]] %s3395_s16 }
   0xe   :  { %21 = vsyncpa [#allocation3], 0 }
   0xf   :  { %23 = vsyncpa [#allocation3 + $0x1], 0 }
  0x10   :  { %24 = vsyncpa [#allocation5], 0 }
  0x11   :  { %26 = vsyncpa [#allocation5 + $0x1], 0  ;;  %s2897_s21 = smov 0   ;;  %s2899_s22 = smov 0  }
  0x12   :  { %s2901_s23 = smov 0   ;;  %s2903_s24 = smov 0  }
  0x13   :  { %s2905_s25 = smov 0   ;;  %s2907_s26 = smov 0  }
  0x14   :  { %s2909_s27 = smov 0   ;;  %s2911_s28 = smov 0  }
  0x15 LB: > { %3417 = sst [smem:[#allocation8_spill]] %s2777_s22  ;;  %s2202_s29 = sadd.s32 4294967295, %s2801_s28   ;;  %s2801_s28 = sphi %s2911_s28, %s32_s28   ;;  %s2797_s27 = sphi %s2909_s27, %s3461_s27   ;;  %s2793_s26 = sphi %s2907_s26, %s3460_s26   ;;  %s2789_s25 = sphi %s2905_s25, %s3459_s25   ;;  %s2785_s24 = sphi %s2903_s24, %s3458_s24   ;;  %s2781_s23 = sphi %s2901_s23, %s3457_s23   ;;  %s2777_s22 = sphi %s2899_s22, %s3456_s22   ;;  %s2773_s21 = sphi %s2897_s21, %s3455_s21  }
  0x16   : > { %3418 = sst [smem:[#allocation9_spill]] %s2781_s23  ;;  %s41_s30 = sadd.s32 1, %s2793_s26 }
  0x17   : > { %3419 = sst [smem:[#allocation10_spill]] %s2793_s26  ;;  %p42_p0 = scmp.ge.s32.totalorder %s41_s30, 2 }
  0x18   : > { %3420 = sst [smem:[#allocation11_spill]] %s2797_s27  ;;  %s44_s0 = sadd.s32 1, %s2797_s27 }
  0x19   : > { %3421 = sst [smem:[#allocation12_spill]] %s2801_s28  ;;  %s103_s17 = sadd.s32 1, %s2781_s23 }
  0x1a   : > { %p110_p1 = scmp.ne.s32.totalorder %s2781_s23, %s2777_s22  ;;  %s3463_s30 = smov (%p42_p0, %s41_s30), 0 }
  0x1b   : > { %3422 = sst [smem:[#allocation13_spill]] %s3463_s30  ;;  %s3465_s0 = smov (!%p42_p0, %s44_s0), %s2797_s27 }
  0x1c   : > { %s100_s18 = ssub.s32 %s2793_s26, %s3463_s30  ;;  %p111_p2 = scmp.eq.s32.totalorder %s2801_s28, 0 }
  0x1d   : > { %p46_p3 = scmp.ge.s32.totalorder %s3465_s0, 2  ;;  %p101_p4 = scmp.eq.s32.totalorder %s100_s18, 0 }
  0x1e   : > { %p112_p5 = por %p111_p2, %p110_p1  ;;  %p116_p6 = scmp.ne.s32.totalorder %s2777_s22, %s2773_s21 }
  0x1f   : > { %s3467_s0 = smov (%p46_p3, %s3465_s0), 0  ;;  %p117_p7 = scmp.eq.s32.totalorder %s2202_s29, 0 }
  0x20   : > { %3423 = sst [smem:[#allocation14_spill]] %s3467_s0  ;;  %p2479_p8 = scmp.lt.s32.totalorder %s2801_s28, 4 }
  0x21   : > { %s2951_s19 = scalar_select %p101_p4, %s2781_s23, %s103_s17  }
  0x22   : > { %s2955_s20 = sand.u32 1, %s2781_s23   ;;  %p2957_p9 = por %p117_p7, %p116_p6 }
  0x23   : > { %3424 = sst [smem:[#allocation15_spill]] %s2951_s19  ;;  %s2464_s30 = smul.u32 384, %s2955_s20 }
  0x24   : > { %s3425_s15 = scalar_select %p2957_p9, 1, 0 }
  0x25   : > { %p2962_p10 = pnand %p2479_p8, %p112_p5  ;;  %s2465_s21 = smul.u32 6144, %s2793_s26 }
  0x26   : > { %s3427_s2 = sld [smem:[#allocation19_spill]]  ;;  %s517_s0 = scalar_lea.vmem [#allocation2], %s2464_s30 }
  0x27   : > { %s524_s19 = sshll.u32 %s517_s0, 4  ;;  %s514_s23 = scalar_lea.sflag [#allocation3], %s2955_s20  ;;  %s2972_s19 = int_to_ptr.vmem [resolvable:$true] %s524_s19 }
  0x28   : > { %p2673_p12 = pneg %p2962_p10 }
  0x2c   : > { %s2970_s29 = scalar_lea.hbm %s3427_s2, %s2465_s21  ;;  %s2676_s18 = scalar_lea.hbm %s3427_s2, 12288 }
  0x2d   : > { %s2671_s14 = scalar_lea.hbm %s2970_s29, 6144  ;;  %p2677_p1 = scmp.lt.u32.totalorder %s2970_s29, %s3427_s2 }
  0x2e   : > { %p2672_p11 = scmp.ne.s32.totalorder %s2970_s29, %s2671_s14  ;;  %p2678_p2 = scmp.lt.u32.totalorder %s2676_s18, %s2671_s14 }
  0x2f   : > { %p2680_p4 = scmp.lt.u32.totalorder %s2671_s14, %s2970_s29 }
  0x30   : > { %p2674_p13 = pnand %p2673_p12, %p2672_p11  ;;  %p2679_p3 = por %p2678_p2, %p2677_p1 }
  0x32   : > { %p2675_p0 = pneg %p2674_p13  ;;  %p2681_p5 = por %p2680_p4, %p2679_p3 }
  0x34   : > { %p2682_p6 = pnand %p2681_p5, %p2675_p0 }
  0x36   : > { %2685 = shalt.err (!%p2682_p6)
}
  0x37   : > { %s2686_s30 = scalar_lea.vmem %s2972_s19, 6144  ;;  %s2803_s0 = smov [#allocation2]  }
  0x38   : > { %p2687_p7 = scmp.ne.s32.totalorder %s2972_s19, %s2686_s30  ;;  %s2691_s17 = sshll.u32 %s2803_s0, 4  ;;  %s2692_s17 = int_to_ptr.vmem [resolvable:$false] %s2691_s17 }
  0x39   : > { %s2693_s13 = scalar_lea.vmem %s2692_s17, 12288  ;;  %p2694_p13 = scmp.lt.s32.totalorder %s2972_s19, %s2692_s17 }
  0x3a   : > { %p2689_p8 = pnand %p2687_p7, %p2673_p12  ;;  %p2695_p1 = scmp.lt.s32.totalorder %s2693_s13, %s2686_s30 }
  0x3c   : > { %p2690_p11 = pneg %p2689_p8  ;;  %p2696_p2 = por %p2695_p1, %p2694_p13 }
  0x3e   : > { %p2697_p3 = pnand %p2696_p2, %p2690_p11 }
  0x40   : > { %2700 = shalt.err (!%p2697_p3)
}
  0x41   : > { %s2804_s14 = smov 384   ;;  %s2805_s16 = smov 24  }
  0x42   : > { %2475 = dma.hbm_to_vmem [thread:$0]  (!%p2962_p10), %s2970_s29, 6144, %s2972_s19, %s514_s23, %s2804_s14, %s2804_s14, %s2805_s16  }
  0x43   : > { %p2210_p0 = scmp.ge.s32.totalorder %s2801_s28, 1  ;;  %p618_p4 = scmp.lt.s32.totalorder %s2801_s28, 5 }
  0x44   : > { %s2207_s21 = sshll.u32 %s2955_s20, 6  ;;  %s2313_s30 = sshll.u32 %s2793_s26, 10 }
  0x45   : > { %p3005_p5 = pnand %p2210_p0, %p618_p4  ;;  %s585_s0 = scalar_lea.vmem [#allocation4], %s2207_s21 }
  0x46   : > { %s592_s17 = sshll.u32 %s585_s0, 4  ;;  %s3429_s10 = sld [smem:[#allocation24_spill]]  ;;  %s3015_s17 = int_to_ptr.vmem [resolvable:$true] %s592_s17 }
  0x47   : > { %s582_s23 = scalar_lea.sflag [#allocation5], %s2955_s20 }
  0x4c   : > { %s3013_s12 = scalar_lea.hbm %s3429_s10, %s2313_s30  ;;  %s2706_s16 = scalar_lea.hbm %s3429_s10, 2048 }
  0x4d   : > { %s2701_s19 = scalar_lea.hbm %s3013_s12, 1024  ;;  %p2707_p11 = scmp.lt.u32.totalorder %s3013_s12, %s3429_s10 }
  0x4e   : > { %p2702_p6 = scmp.ne.s32.totalorder %s3013_s12, %s2701_s19  ;;  %p2708_p13 = scmp.lt.u32.totalorder %s2706_s16, %s2701_s19 }
  0x4f   : > { %p2710_p2 = scmp.lt.u32.totalorder %s2701_s19, %s3013_s12 }
  0x50   : > { %p2704_p7 = pnand %p2702_p6, %p2673_p12  ;;  %p2709_p1 = por %p2708_p13, %p2707_p11 }
  0x52   : > { %p2705_p8 = pneg %p2704_p7  ;;  %p2711_p3 = por %p2710_p2, %p2709_p1 }
  0x54   : > { %p2712_p0 = pnand %p2711_p3, %p2705_p8 }
  0x56   : > { %2715 = shalt.err (!%p2712_p0)
}
  0x57   : > { %s2716_s30 = scalar_lea.vmem %s3015_s17, 1024  ;;  %s2806_s0 = smov [#allocation4]  }
  0x58   : > { %p2717_p4 = scmp.ne.s32.totalorder %s3015_s17, %s2716_s30  ;;  %s2721_s13 = sshll.u32 %s2806_s0, 4  ;;  %s2722_s13 = int_to_ptr.vmem [resolvable:$false] %s2721_s13 }
  0x59   : > { %s2723_s29 = scalar_lea.vmem %s2722_s13, 2048  ;;  %p2724_p9 = scmp.lt.s32.totalorder %s3015_s17, %s2722_s13 }
  0x5a   : > { %p2719_p6 = pnand %p2717_p4, %p2673_p12  ;;  %p2725_p11 = scmp.lt.s32.totalorder %s2723_s29, %s2716_s30 }
  0x5c   : > { %p2720_p7 = pneg %p2719_p6  ;;  %p2726_p13 = por %p2725_p11, %p2724_p9 }
  0x5e   : > { %p2727_p1 = pnand %p2726_p13, %p2720_p7 }
  0x60   : > { %2730 = shalt.err (!%p2727_p1)
}
  0x61   : > { %s2807_s19 = smov 64   ;;  %s2808_s14 = smov 4  }
  0x62   : > { %2478 = dma.hbm_to_vmem [thread:$0]  (!%p2962_p10), %s3013_s12, 1024, %s3015_s17, %s582_s23, %s2807_s19, %s2807_s19, %s2808_s14  }
  0x63   : > { %622 = sbr.rel (%p3005_p5) target bundleno = 3060 (0xbf4), region = 84 }
  0x6a   : > { %s624_s16 = sand.u32 1, %s2777_s22   ;;  %p3430_p9 = scmp.ne.s32.totalorder %s3425_s15, 0 }
  0x6b   : > { %s2466_s2 = smul.u32 384, %s624_s16  ;;  %s625_s21 = scalar_lea.sflag [#allocation3], %s624_s16 }
  0x6d   : > { %s3046_s30 = scalar_lea.vmem [#allocation2], %s2466_s2 }
  0x6e   : > { %2764 = dma.done.wait (%p3430_p9), %s625_s21, 6144  }
  0x6f   : > { %2766 = vsyncadd (%p3430_p9), %s625_s21, 4294961152  ;;  %s2211_s0 = sshll.u32 %s624_s16, 6  ;;  %s634_s27 = scalar_lea.sflag [#allocation5], %s624_s16 }
  0x70   : > { %s3052_s20 = scalar_lea.vmem [#allocation4], %s2211_s0 }
  0x71   : > { %3431 = sst [smem:[#allocation16_spill]] %s3052_s20 }
  0x72   : > { %2768 = dma.done.wait (%p3430_p9), %s634_s27, 1024  }
  0x73   : > { %2770 = vsyncadd (%p3430_p9), %s634_s27, 4294966272  ;;  %p732_p10 = scmp.lt.s32.totalorder %s2789_s25, 1  ;;  %p739_p12 = scmp.lt.s32.totalorder %s2785_s24, 1 }
  0x74   : > { %s3433_s19 = sld [smem:[#allocation17_spill]]  ;;  %s3434_s3 = sld [smem:[#allocation20_spill]] }
  0x75   : > { %s3469_s25 = smov (!%p732_p10, %s2789_s25), 1  ;;  %s3435_s4 = sld [smem:[#allocation21_spill]] }
  0x76   : > { %s3064_s12 = scalar_select %p739_p12, %s2785_s24, 1 }
  0x77   : > { %s2212_s15 = sshll.u32 %s3469_s25, 3  ;;  %s3438_s13 = sld [smem:[#allocation25_spill]] }
  0x78   : > { %s2467_s16 = smul.u32 6, %s3064_s12  ;;  %s2314_s2 = sshll.u32 %s3064_s12, 7 }
  0x79   : > { %s2315_s21 = sshll.u32 %s3064_s12, 6  ;;  %s3439_s1 = sld [smem:[#allocation26_spill]] }
  0x7a   : > { %s735_s14 = scalar_lea.vmem %s3433_s19, %s2212_s15  ;;  %s3083_s22 = scalar_lea.vmem %s3434_s3, %s2467_s16 }
  0x7b   : > { %s3088_s18 = scalar_lea.vmem %s3435_s4, %s2314_s2  ;;  %s3106_s3 = scalar_lea.vmem %s3387_s8, %s2315_s21 }
  0x7c   : > { %s767_s2 = scalar_lea.vmem %s3390_s11, %s3064_s12  ;;  %s3440_s0 = sld [smem:[#allocation29_spill]] }
  0x7d   : > { %s770_s4 = scalar_lea.vmem %s3438_s13, %s3064_s12  ;;  %p2218_p5 = scmp.ne.s32.totalorder %s2785_s24, 0 }
  0x7e   : > { %v783_v0 = vld [vmem:[%s735_s14] sm:$0xff] (!%p2218_p5)  ;;  %s3442_s13 = sld [smem:[#allocation28_spill]] (!%p2218_p5) }
  0x7f   : > { %s773_s7 = scalar_lea.vmem %s3439_s1, %s3064_s12  ;;  %782 = sbr.rel (%p2218_p5) target bundleno = 297 (0x129), region = 96  ;;  %786 = vadd.xlane.f32.xlu0 (!%p2218_p5), %v783_v0  ;;  %v789_v1 = vmul.f32 (!%p2218_p5), %v783_v0, %v783_v0 }
  0x82   : > { %s3123_s10 = scalar_lea.vmem %s3440_s0, %s2212_s15  ;;  %s3441_s15 = sld [smem:[#allocation27_spill]] (!%p2218_p5) }
  0x83   : > { %790 = vadd.xlane.f32.xlu0 (!%p2218_p5), %v789_v1 }
  0x84   : > { %v2220_v13 = vld [vmem:[%s3442_s13] ss:$0 sm:$0xff] (!%p2218_p5) }
  0x88   : > { %v2219_v11 = vld [vmem:[%s3441_s15] ss:$0 sm:$0xff] }
 0x10c   : > { %v787_v2 = vpop.xlane.xlu0 %786 }
 0x10d   : > { %v788_v3 = vmul.f32 0.03125, %v787_v2 }
 0x10f   : > { %v793_v5 = vmul.f32 %v788_v3, %v788_v3  ;;  %v795_v9 = vsub.f32 %v783_v0, %v788_v3 }
 0x110   : > { %v791_v4 = vpop.xlane.xlu0 %790 }
 0x111   : > { %v792_v6 = vmul.f32 0.03125, %v791_v4 }
 0x113   : > { %v794_v7 = vsub.f32 %v792_v6, %v793_v5 }
 0x115   : > { %v796_v8 = vadd.f32 1e-12, %v794_v7 }
 0x117   : > { %2551 = vrsqrt.f32 %v796_v8 }
 0x121   : > { %v2552_v10 = vpop.eup %2551 }
 0x122   : > { %v798_v12 = vmul.f32 %v2552_v10, %v795_v9 }
 0x124   : > { %v805_v14 = vmul.f32 %v2219_v11, %v798_v12 }
 0x126   : > { %v812_v15 = vadd.f32 %v2220_v13, %v805_v14 }
 0x128   : > { %813 = vst [vmem:[%s3123_s10] sm:$0xff] %v812_v15 }
 0x129 PF: > { %v2553_v16 = vld [vmem:[%s3046_s30 + $0xc] ss:$24 sps:$4 sm:$0xff]   ;;  %v2555_v17 = vld [vmem:[%s3046_s30 + $0x8] ss:$24 sps:$4 sm:$0xff]   ;;  %v2809_v18 = vmov 0   ;;  %v2810_v51 = vmov 0.0   ;;  %v867_v52 = vlaneseq  ;;  %s3451_s15 = scalar_lea.vmem %s3388_s9, %s3064_s12 }
 0x12a   : > { %1210 = vmatprep.mubr.bf16.mxu1 %v2809_v18  ;;  %1169 = vmatprep.mubr.bf16.mxu0 %v2809_v18  ;;  %v2556_v19 = vld [vmem:[%s3046_s30 + $0x3c] ss:$24 sps:$4 sm:$0xff]   ;;  %v2560_v21 = vld [vmem:[%s3046_s30 + $0x38] ss:$24 sps:$4 sm:$0xff]   ;;  %v2562_v23 = vld [vmem:[%s3046_s30 + $0x6c] ss:$24 sps:$4 sm:$0xff]  }
 0x12b   : > { %1178 = vmatprep.subr.bf16.mxu1 %v2553_v16  ;;  %v2558_v20 = vld [vmem:[%s3046_s30 + $0x4] ss:$24 sps:$4 sm:$0xff]   ;;  %v2561_v22 = vld [vmem:[%s3046_s30] ss:$24 sps:$4 sm:$0xff]   ;;  %v2564_v24 = vld [vmem:[%s3046_s30 + $0x34] ss:$24 sps:$4 sm:$0xff]  }
 0x12c   : > { %1179 = vmatpush1.bf16.msra.mxu1 %v2555_v17  ;;  %1137 = vmatprep.subr.bf16.mxu0 %v2558_v20  ;;  %v2567_v25 = vld [vmem:[%s3046_s30 + $0x30] ss:$24 sps:$4 sm:$0xff]   ;;  %v2568_v27 = vld [vmem:[%s3046_s30 + $0x9c] ss:$24 sps:$4 sm:$0xff]   ;;  %v2573_v29 = vld [vmem:[%s3046_s30 + $0x60] ss:$24 sps:$4 sm:$0xff]  }
 0x12d   : > { %1180 = vmatprep.subr.bf16.mxu1 %v2556_v19  ;;  %1138 = vmatpush1.bf16.msra.mxu0 %v2561_v22  ;;  %v2566_v26 = vld [vmem:[%s3046_s30 + $0x68] ss:$24 sps:$4 sm:$0xff]   ;;  %v2570_v28 = vld [vmem:[%s3046_s30 + $0x64] ss:$24 sps:$4 sm:$0xff]   ;;  %v2572_v30 = vld [vmem:[%s3046_s30 + $0x98] ss:$24 sps:$4 sm:$0xff]  }
 0x12e   : > { %1139 = vmatprep.subr.bf16.mxu0 %v2564_v24  ;;  %v2576_v31 = vld [vmem:[%s3046_s30 + $0x94] ss:$24 sps:$4 sm:$0xff]   ;;  %v2578_v33 = vld [vmem:[%s3046_s30 + $0xc8] ss:$24 sps:$4 sm:$0xff]   ;;  %v2582_v35 = vld [vmem:[%s3046_s30 + $0xc4] ss:$24 sps:$4 sm:$0xff]  }
 0x12f   : > { %v2574_v32 = vld [vmem:[%s3046_s30 + $0xcc] ss:$24 sps:$4 sm:$0xff]   ;;  %v2579_v34 = vld [vmem:[%s3046_s30 + $0x90] ss:$24 sps:$4 sm:$0xff]   ;;  %v2580_v36 = vld [vmem:[%s3046_s30 + $0xfc] ss:$24 sps:$4 sm:$0xff]  }
 0x130   : > { %1181 = vmatpush1.bf16.msra.mxu1 %v2560_v21  ;;  %v2585_v37 = vld [vmem:[%s3046_s30 + $0xc0] ss:$24 sps:$4 sm:$0xff]   ;;  %v2588_v39 = vld [vmem:[%s3046_s30 + $0xf4] ss:$24 sps:$4 sm:$0xff]   ;;  %v2591_v42 = vld [vmem:[%s3046_s30 + $0xf0] ss:$24 sps:$4 sm:$0xff]  }
 0x131   : > { %1182 = vmatprep.subr.bf16.mxu1 %v2562_v23  ;;  %1140 = vmatpush1.bf16.msra.mxu0 %v2567_v25  ;;  %v2584_v38 = vld [vmem:[%s3046_s30 + $0xf8] ss:$24 sps:$4 sm:$0xff]   ;;  %v2586_v40 = vld [vmem:[%s3046_s30 + $0x12c] ss:$24 sps:$4 sm:$0xff]   ;;  %v2590_v41 = vld [vmem:[%s3046_s30 + $0x128] ss:$24 sps:$4 sm:$0xff]  }
 0x132   : > { %1141 = vmatprep.subr.bf16.mxu0 %v2570_v28  ;;  %v2594_v43 = vld [vmem:[%s3046_s30 + $0x124] ss:$24 sps:$4 sm:$0xff]   ;;  %v2597_v45 = vld [vmem:[%s3046_s30 + $0x120] ss:$24 sps:$4 sm:$0xff]   ;;  %v2598_v48 = vld [vmem:[%s3046_s30 + $0x154] ss:$24 sps:$4 sm:$0xff]  }
 0x133   : > { %v2592_v44 = vld [vmem:[%s3046_s30 + $0x15c] ss:$24 sps:$4 sm:$0xff]   ;;  %v2596_v46 = vld [vmem:[%s3046_s30 + $0x158] ss:$24 sps:$4 sm:$0xff]   ;;  %v3166_v47 = vld [vmem:[%s3123_s10] sm:$0xff]  ;;  %vm2811_vm0 = vmmov 0  }
 0x134   : > { %1183 = vmatpush1.bf16.msra.mxu1 %v2566_v26  ;;  %v2600_v49 = vld [vmem:[%s3046_s30 + $0x150] ss:$24 sps:$4 sm:$0xff]   ;;  %v3172_v50 = vpack.c.bf16 %v3166_v47, %v3166_v47  ;;  %v3180_v53 = vshrl.u32 %v867_v52, 7  ;;  %v3184_v55 = vld [vmem:[%s3083_s22] sm:$0x3f]  ;;  %s3443_s26 = sld [smem:[#allocation18_spill]] }
 0x135   : > { %1184 = vmatprep.subr.bf16.mxu1 %v2568_v27  ;;  %1142 = vmatpush1.bf16.msra.mxu0 %v2573_v29  ;;  %v2601_v7 = vld [vmem:[%s3046_s30 + $0x10] ss:$24 sps:$4 sm:$0xff]   ;;  %v2603_v8 = vld [vmem:[%s3046_s30 + $0x14] ss:$24 sps:$4 sm:$0xff]   ;;  %v2606_v9 = vld [vmem:[%s3046_s30 + $0x44] ss:$24 sps:$4 sm:$0xff]  }
 0x136   : > { %1143 = vmatprep.subr.bf16.mxu0 %v2576_v31  ;;  %v877_v54 = vsub.s32 2, %v3180_v53  ;;  %v869_v56 = vsub.s32 0, %v3180_v53  ;;  %v2604_v10 = vld [vmem:[%s3046_s30 + $0x40] ss:$24 sps:$4 sm:$0xff]   ;;  %v2609_v11 = vld [vmem:[%s3046_s30 + $0x74] ss:$24 sps:$4 sm:$0xff]  }
 0x137   : > { %v2607_v12 = vld [vmem:[%s3046_s30 + $0x70] ss:$24 sps:$4 sm:$0xff]   ;;  %v2612_v13 = vld [vmem:[%s3046_s30 + $0xa4] ss:$24 sps:$4 sm:$0xff]   ;;  %v2610_v14 = vld [vmem:[%s3046_s30 + $0xa0] ss:$24 sps:$4 sm:$0xff]  }
 0x138   : > { %1185 = vmatpush1.bf16.msra.mxu1 %v2572_v30  ;;  %v878_v57 = vrot.slane %v3184_v55, %v877_v54  ;;  %v870_v59 = vrot.slane %v3184_v55, %v869_v56  ;;  %v2615_v15 = vld [vmem:[%s3046_s30 + $0xd4] ss:$24 sps:$4 sm:$0xff]   ;;  %v2613_v16 = vld [vmem:[%s3046_s30 + $0xd0] ss:$24 sps:$4 sm:$0xff]   ;;  %v2618_v17 = vld [vmem:[%s3046_s30 + $0x104] ss:$24 sps:$4 sm:$0xff]  }
 0x139   : > { %1186 = vmatprep.subr.bf16.mxu1 %v2574_v32  ;;  %1144 = vmatpush1.bf16.msra.mxu0 %v2579_v34  ;;  %v2621_v19 = vld [vmem:[%s3046_s30 + $0x134] ss:$24 sps:$4 sm:$0xff]   ;;  %v2619_v20 = vld [vmem:[%s3046_s30 + $0x130] ss:$24 sps:$4 sm:$0xff]   ;;  %v2624_v21 = vld [vmem:[%s3046_s30 + $0x164] ss:$24 sps:$4 sm:$0xff]  }
 0x13a   : > { %1145 = vmatprep.subr.bf16.mxu0 %v2582_v35  ;;  %v2622_v22 = vld [vmem:[%s3046_s30 + $0x160] ss:$24 sps:$4 sm:$0xff]   ;;  %s3444_s16 = scalar_lea.vmem %s3443_s26, %s3469_s25  ;;  %vm1341_vm1 = vcmask 64512   ;;  %v885_v30 = vsub.s32 4, %v3180_v53  ;;  %vm1358_vm2 = vcmask 1043456   ;;  %s3446_s28 = sld [smem:[#allocation16_spill]] }
 0x13b   : > { %v3221_v23 = vld [vmem:[%s3444_s16] ss:$0 sm:$0xff]  ;;  %s3447_s23 = sld [smem:[#allocation22_spill]]  ;;  %s3449_s27 = sld [smem:[#allocation23_spill]] }
 0x13c   : > { %1187 = vmatpush1.bf16.msra.mxu1 %v2578_v33  ;;  %v886_v31 = vrot.slane %v3184_v55, %v885_v30  ;;  %v2625_v56 = vld [vmem:[%s3088_s18] sm:$0xff]   ;;  %v2636_v30 = vld [vmem:[%s3088_s18 + $0x58] sm:$0xff]  }
 0x13d   : > { %1188 = vmatprep.subr.bf16.mxu1 %v2580_v36  ;;  %1146 = vmatpush1.bf16.msra.mxu0 %v2585_v37 }
 0x13e   : > { %1147 = vmatprep.subr.bf16.mxu0 %v2588_v39 }
 0x140   : > { %1189 = vmatpush1.bf16.msra.mxu1 %v2584_v38 }
 0x141   : > { %1190 = vmatprep.subr.bf16.mxu1 %v2586_v40  ;;  %1148 = vmatpush1.bf16.msra.mxu0 %v2591_v42  ;;  %s3448_s17 = scalar_lea.vmem %s3447_s23, %s3064_s12  ;;  %s3450_s0 = scalar_lea.vmem %s3449_s27, %s3064_s12 }
 0x142   : > { %1149 = vmatprep.subr.bf16.mxu0 %v2594_v43 }
 0x144   : > { %1191 = vmatpush1.bf16.msra.mxu1 %v2590_v41  ;;  %v889_v41 = vsub.s32 5, %v3180_v53 }
 0x145   : > { %1192 = vmatprep.subr.bf16.mxu1 %v2592_v44  ;;  %1150 = vmatpush1.bf16.msra.mxu0 %v2597_v45 }
 0x146   : > { %1151 = vmatprep.subr.bf16.mxu0 %v2598_v48  ;;  %v890_v43 = vrot.slane %v3184_v55, %v889_v41 }
 0x148   : > { %1193 = vmatpush1.bf16.msra.mxu1 %v2596_v46 }
 0x149   : > { %1152 = vmatpush1.bf16.msra.mxu0 %v2600_v49  ;;  %2360 = vmatprep.subr.bf16.mxu1 %v2810_v51 }
 0x14a   : > { %1219 = vmatprep.subr.bf16.mxu0 %v2603_v8 }
 0x14b   : > { %1211 = vmatmul.mubr.bf16.vlgmr.msra.gmra.mrb[0].mxu1 %v3172_v50 }
 0x14c   : > { %1170 = vmatmul.mubr.bf16.vlgmr.msra.gmra.mrb[0].mxu0 %v3172_v50  ;;  %2362 = vmatprep.mubr.msk.bf16.mxu1 %vm2811_vm0, %v2810_v51 }
 0x14d   : > { %1251 = vmatprep.mubr.bf16.mxu0 %v2809_v18  ;;  %1220 = vmatpush1.bf16.msra.mxu0 %v2601_v7  ;;  %v2616_v18 = vld [vmem:[%s3046_s30 + $0x100] ss:$24 sps:$4 sm:$0xff]  }
 0x14e   : > { %1221 = vmatprep.subr.bf16.mxu0 %v2606_v9 }
 0x151   : > { %1222 = vmatpush1.bf16.msra.mxu0 %v2604_v10 }
 0x152   : > { %1223 = vmatprep.subr.bf16.mxu0 %v2609_v11 }
 0x155   : > { %1224 = vmatpush1.bf16.msra.mxu0 %v2607_v12 }
 0x156   : > { %1225 = vmatprep.subr.bf16.mxu0 %v2612_v13 }
 0x159   : > { %1226 = vmatpush1.bf16.msra.mxu0 %v2610_v14 }
 0x15a   : > { %1227 = vmatprep.subr.bf16.mxu0 %v2615_v15 }
 0x15d   : > { %1228 = vmatpush1.bf16.msra.mxu0 %v2613_v16 }
 0x15e   : > { %1229 = vmatprep.subr.bf16.mxu0 %v2618_v17 }
 0x161   : > { %1230 = vmatpush1.bf16.msra.mxu0 %v2616_v18 }
 0x162   : > { %1231 = vmatprep.subr.bf16.mxu0 %v2621_v19 }
 0x165   : > { %1232 = vmatpush1.bf16.msra.mxu0 %v2619_v20 }
 0x166   : > { %1233 = vmatprep.subr.bf16.mxu0 %v2624_v21 }
 0x169   : > { %1234 = vmatpush1.bf16.msra.mxu0 %v2622_v22 }
 0x16a   : > { %2404 = vmatprep.subr.bf16.mxu0 %v2810_v51 }
 0x16c   : > { %1252 = vmatmul.mubr.bf16.vlgmr.msra.gmra.mrb[4].mxu0 %v3172_v50 }
 0x16d   : > { %2420 = vmatprep.mubr.msk.bf16.mxu0 %vm2811_vm0, %v2810_v51 }
 0x21e   : > { %v1212_v58 = vpop.f32.mrb[0].mxu1 }
 0x21f   : > { %v1213_v60 = vadd.f32 %v1212_v58, %v878_v57  ;;  %v3189_v61 = vpop.f32.mrb[1].mxu1  ;;  %v1171_v1 = vpop.f32.mrb[0].mxu0  ;;  %v2626_v58 = vld [vmem:[%s3088_s18 + $0x8] sm:$0xff]  }
 0x220   : > { %v1216_v62 = vpop.f32.mrb[2].mxu1  ;;  %v1172_v2 = vadd.f32 %v1171_v1, %v870_v59  ;;  %v3191_v3 = vpop.f32.mrb[1].mxu0  ;;  %v2627_v59 = vld [vmem:[%s3088_s18 + $0x10] sm:$0xff]   ;;  %v2632_v1 = vld [vmem:[%s3088_s18 + $0x38] sm:$0xff]  }
 0x221   : > { %v1294_v63 = vpack.c.bf16 %v1213_v60, %v1213_v60  ;;  %v1217_v0 = vpop.f32.mrb[3].mxu1  ;;  %v1175_v4 = vpop.f32.mrb[2].mxu0  ;;  %v2628_v60 = vld [vmem:[%s3088_s18 + $0x18] sm:$0xff]   ;;  %v2629_v62 = vld [vmem:[%s3088_s18 + $0x20] sm:$0xff]  }
 0x222   : > { %v1176_v5 = vpop.f32.mrb[3].mxu0  ;;  %v1293_v6 = vpack.c.bf16 %v1172_v2, %v1172_v2  ;;  %v2631_v0 = vld [vmem:[%s3088_s18 + $0x30] sm:$0xff]   ;;  %v881_v2 = vsub.s32 3, %v3180_v53 }
 0x223   : > { %2361 = vmatpush3.bf16.xpose.msra.mxu1 %v1294_v63  ;;  %v2630_v63 = vld [vmem:[%s3088_s18 + $0x28] sm:$0xff]   ;;  %v873_v5 = vsub.s32 1, %v3180_v53 }
 0x224   : > { %2366 = vmatprep.subr.bf16.mxu1 %v2810_v51  ;;  %v882_v4 = vrot.slane %v3184_v55, %v881_v2 }
 0x225   : > { %v874_v8 = vrot.slane %v3184_v55, %v873_v5 }
 0x227   : > { %v1174_v14 = vadd.f32 %v3191_v3, %v874_v8 }
 0x229   : > { %v1498_v53 = vpack.c.bf16 %v1174_v14, %v1174_v14  ;;  %v2290_v14 = vld [vmem:[%s3450_s0] ss:$0 sm:$0xff] }
 0x22a   : > { %2363 = vmatmul.mubr.bf16.vlgmr.msra.gmra.mrb[4].mxu1 %v1293_v6  ;;  %v1215_v6 = vadd.f32 %v3189_v61, %v882_v4 }
 0x22b   : > { %2368 = vmatprep.mubr.msk.bf16.mxu1 %vm2811_vm0, %v2810_v51 }
 0x22c   : > { %v1499_v11 = vpack.c.bf16 %v1215_v6, %v1215_v6 }
 0x23f   : > { %v1253_v32 = vpop.f32.mrb[4].mxu0 }
 0x240   : > { %v1254_v33 = vadd.f32 %v1253_v32, %v886_v31  ;;  %v1255_v42 = vpop.f32.mrb[5].mxu0  ;;  %v2637_v31 = vld [vmem:[%s3088_s18 + $0x60] sm:$0xff]   ;;  %v2638_v32 = vld [vmem:[%s3088_s18 + $0x68] sm:$0xff]  }
 0x241   : > { %v1257_v44 = vpop.f32.mrb[6].mxu0  ;;  %v1256_v46 = vadd.f32 %v1255_v42, %v890_v43 }
 0x242   : > { %v1354_v34 = vpack.c.bf16 %v1254_v33, %v1254_v33  ;;  %v1258_v45 = vpop.f32.mrb[7].mxu0  ;;  %v2639_v33 = vld [vmem:[%s3088_s18 + $0x70] sm:$0xff]   ;;  %v2641_v44 = vld [vmem:[%s3106_s3] sm:$0xff]  }
 0x243   : > { %v1552_v48 = vpack.c.bf16 %v1256_v46, %v1256_v46 }
 0x244   : > { %v1360_v35 = vsel %vm1358_vm2, %v1354_v34, 0 }
 0x245   : > { %2367 = vmatpush3.bf16.msra.mxu1 %v1360_v35  ;;  %v1557_v49 = vsel %vm1358_vm2, %v1552_v48, 0 }
 0x246   : > { %2372 = vmatprep.subr.bf16.mxu1 %v2810_v51 }
 0x2fd   : > { %v1335_v24 = vpop.f32.mrb[4].mxu1 }
 0x2fe   : > { %v1336_v25 = vadd.f32 %v3221_v23, %v1335_v24  ;;  %v2364_v26 = vpop.f32.mrb[5].mxu1 }
 0x2ff   : > { %v1338_v27 = vpop.f32.mrb[6].mxu1 }
 0x300   : > { %v2365_v28 = vpop.f32.mrb[7].mxu1  ;;  %v1342_v29 = vsel %vm1341_vm1, %v1336_v25, -inf }
 0x301   : > { %1343 = vmax.xlane.f32.xlu0 %v1342_v29  ;;  %v2633_v28 = vld [vmem:[%s3088_s18 + $0x40] sm:$0xff]   ;;  %v2635_v29 = vld [vmem:[%s3088_s18 + $0x50] sm:$0xff]  }
 0x302   : > { %2405 = vmatpush3.bf16.msra.mxu0 %v2633_v28 }
 0x303   : > { %2406 = vmatprep.subr.bf16.mxu0 %v2810_v51 }
 0x38e   : > { %v1344_v36 = vpop.xlane.xlu0 %1343 }
 0x38f   : > { %v1345_v37 = vsub.f32 %v1336_v25, %v1344_v36 }
 0x391   : > { %v1346_v38 = vmul.f32 1.442695, %v1345_v37 }
 0x393   : > { %2657 = vpow2.f32 %v1346_v38  ;;  %v2640_v38 = vld [vmem:[%s3088_s18 + $0x78] sm:$0xff]  }
 0x39d   : > { %v2658_v39 = vpop.eup %2657 }
 0x39e   : > { %v1348_v40 = vsel %vm1341_vm1, %v2658_v39, 0.0 }
 0x39f   : > { %1349 = vadd.xlane.f32.xlu0 %v1348_v40 }
 0x42c   : > { %v1350_v50 = vpop.xlane.xlu0 %1349 }
 0x42d   : > { %2659 = vrcp.f32 %v1350_v50 }
 0x437   : > { %v2660_v52 = vpop.eup %2659 }
 0x438   : > { %v1352_v54 = vmul.f32 %v2660_v52, %v2658_v39 }
 0x43a   : > { %v1353_v57 = vpack.c.bf16 %v1352_v54, %v1352_v54 }
 0x43c   : > { %2369 = vmatmul.mubr.msk.bf16.vlgmr.msra.gmra.mrb[8].mxu1 %vm1341_vm1, %v1353_v57 }
 0x43d   : > { %2373 = vmatpush3.bf16.msra.mxu1 %v2625_v56  ;;  %2388 = vmatprep.mubr.msk.bf16.mxu1 %vm2811_vm0, %v2810_v51 }
 0x43e   : > { %2374 = vmatprep.subr.bf16.mxu1 %v2810_v51 }
 0x441   : > { %2375 = vmatpush3.bf16.msra.mxu1 %v2626_v58  ;;  %v2642_v58 = vld [vmem:[%s3106_s3 + $0x8] sm:$0xff]  }
 0x442   : > { %2376 = vmatprep.subr.bf16.mxu1 %v2810_v51 }
 0x445   : > { %2377 = vmatpush3.bf16.msra.mxu1 %v2627_v59  ;;  %v2643_v59 = vld [vmem:[%s3106_s3 + $0x10] sm:$0xff]  }
 0x446   : > { %2378 = vmatprep.subr.bf16.mxu1 %v2810_v51 }
 0x449   : > { %2379 = vmatpush3.bf16.msra.mxu1 %v2628_v60  ;;  %v2644_v60 = vld [vmem:[%s3106_s3 + $0x18] sm:$0xff]  }
 0x44a   : > { %2380 = vmatprep.subr.bf16.mxu1 %v2810_v51 }
 0x44d   : > { %2381 = vmatpush3.bf16.msra.mxu1 %v2629_v62  ;;  %v2645_v62 = vld [vmem:[%s3106_s3 + $0x20] sm:$0xff]  }
 0x44e   : > { %2382 = vmatprep.subr.bf16.mxu1 %v2810_v51 }
 0x451   : > { %2383 = vmatpush3.bf16.msra.mxu1 %v2630_v63  ;;  %v2647_v63 = vld [vmem:[%s3106_s3 + $0x30] sm:$0xff]  }
 0x452   : > { %2384 = vmatprep.subr.bf16.mxu1 %v2810_v51 }
 0x455   : > { %2385 = vmatpush3.bf16.msra.mxu1 %v2631_v0  ;;  %v2648_v0 = vld [vmem:[%s3106_s3 + $0x38] sm:$0xff]  }
 0x456   : > { %2386 = vmatprep.subr.bf16.mxu1 %v2810_v51 }
 0x459   : > { %2387 = vmatpush3.bf16.msra.mxu1 %v2632_v1  ;;  %v2649_v1 = vld [vmem:[%s3446_s28] sm:$0xff]  }
 0x45a   : > { %2392 = vmatprep.subr.bf16.mxu1 %v2810_v51 }
 0x50f   : > { %v1396_v7 = vpop.f32.mrb[8].mxu1 }
 0x510   : > { %v1402_v9 = vpack.c.bf16 %v1396_v7, %v1396_v7  ;;  %v2370_v10 = vpop.f32.mrb[9].mxu1 }
 0x511   : > { %v1399_v12 = vpop.f32.mrb[10].mxu1 }
 0x512   : > { %v2371_v13 = vpop.f32.mrb[11].mxu1  ;;  %2389 = vmatmul.mubr.bf16.vlgmr.msra.gmra.mrb[12].mxu1 %v1402_v9  ;;  %v2289_v12 = vld [vmem:[%s3448_s17] ss:$0 sm:$0xff] }
 0x513   : > { %2393 = vmatpush3.bf16.xpose.msra.mxu1 %v1499_v11  ;;  %2394 = vmatprep.mubr.msk.bf16.mxu1 %vm2811_vm0, %v2810_v51 }
 0x514   : > { %2398 = vmatprep.subr.bf16.mxu1 %v2810_v51 }
 0x51a   : > { %2395 = vmatmul.mubr.bf16.vlgmr.msra.gmra.mrb[16].mxu1 %v1498_v53 }
 0x51b   : > { %2399 = vmatpush3.bf16.msra.mxu1 %v1557_v49  ;;  %2400 = vmatprep.mubr.msk.bf16.mxu1 %vm2811_vm0, %v2810_v51 }
 0x51c   : > { %2424 = vmatprep.subr.bf16.mxu1 %v2810_v51 }
 0x5e5   : > { %v1485_v55 = vpop.f32.mrb[12].mxu1 }
 0x5e6   : > { %v2390_v61 = vpop.f32.mrb[13].mxu1 }
 0x5e7   : > { %v1488_v15 = vpop.f32.mrb[14].mxu1 }
 0x5e8   : > { %v2391_v16 = vpop.f32.mrb[15].mxu1  ;;  %v2650_v15 = vld [vmem:[%s3446_s28 + $0x8] sm:$0xff]  }
 0x5e9   : > { %v2651_v16 = vld [vmem:[%s3446_s28 + $0x10] sm:$0xff]  }
 0x5ed   : > { %v1534_v17 = vpop.f32.mrb[16].mxu1 }
 0x5ee   : > { %v1535_v18 = vadd.f32 %v3221_v23, %v1534_v17  ;;  %v2396_v3 = vpop.f32.mrb[17].mxu1  ;;  %v2634_v23 = vld [vmem:[%s3088_s18 + $0x48] sm:$0xff]   ;;  %s3445_s18 = scalar_lea.vmem %s3384_s5, %s3064_s12  ;;  %v2652_v17 = vld [vmem:[%s3446_s28 + $0x18] sm:$0xff]  }
 0x5ef   : > { %v1537_v19 = vpop.f32.mrb[18].mxu1  ;;  %2407 = vmatpush3.bf16.msra.mxu0 %v2634_v23  ;;  %v2279_v45 = vld [vmem:[%s3445_s18] ss:$0 sm:$0xff]  ;;  %v2654_v3 = vld [vmem:[%s3446_s28 + $0x28] sm:$0xff]  }
 0x5f0   : > { %v2397_v20 = vpop.f32.mrb[19].mxu1  ;;  %v1540_v21 = vsel %vm1341_vm1, %v1535_v18, -inf  ;;  %2408 = vmatprep.subr.bf16.mxu0 %v2810_v51  ;;  %v1497_v46 = vadd.f32 %v2279_v45, %v1485_v55  ;;  %v2655_v19 = vld [vmem:[%s3446_s28 + $0x30] sm:$0xff]  }
 0x5f1   : > { %1541 = vmax.xlane.f32.xlu1 %v1540_v21  ;;  %v2656_v20 = vld [vmem:[%s3446_s28 + $0x38] sm:$0xff]   ;;  %v2291_v21 = vld [vmem:[%s3451_s15] ss:$0 sm:$0xff] }
 0x5f3   : > { %2409 = vmatpush3.bf16.msra.mxu0 %v2635_v29 }
 0x5f4   : > { %2410 = vmatprep.subr.bf16.mxu0 %v2810_v51 }
 0x5f7   : > { %2411 = vmatpush3.bf16.msra.mxu0 %v2636_v30 }
 0x5f8   : > { %2412 = vmatprep.subr.bf16.mxu0 %v2810_v51 }
 0x5fb   : > { %2413 = vmatpush3.bf16.msra.mxu0 %v2637_v31 }
 0x5fc   : > { %2414 = vmatprep.subr.bf16.mxu0 %v2810_v51 }
 0x5ff   : > { %2415 = vmatpush3.bf16.msra.mxu0 %v2638_v32 }
 0x600   : > { %2416 = vmatprep.subr.bf16.mxu0 %v2810_v51 }
 0x603   : > { %2417 = vmatpush3.bf16.msra.mxu0 %v2639_v33 }
 0x604   : > { %2418 = vmatprep.subr.bf16.mxu0 %v2810_v51 }
 0x607   : > { %2419 = vmatpush3.bf16.msra.mxu0 %v2640_v38 }
 0x608   : > { %2444 = vmatprep.subr.bf16.mxu0 %v2810_v51 }
 0x67e   : > { %v1542_v22 = vpop.xlane.xlu1 %1541 }
 0x67f   : > { %v1543_v24 = vsub.f32 %v1535_v18, %v1542_v22  ;;  %v2653_v18 = vld [vmem:[%s3446_s28 + $0x20] sm:$0xff]  }
 0x681   : > { %v1544_v25 = vmul.f32 1.442695, %v1543_v24 }
 0x683   : > { %2661 = vpow2.f32 %v1544_v25 }
 0x68d   : > { %v2662_v26 = vpop.eup %2661 }
 0x68e   : > { %v1546_v27 = vsel %vm1341_vm1, %v2662_v26, 0.0 }
 0x68f   : > { %1547 = vadd.xlane.f32.xlu1 %v1546_v27 }
 0x71c   : > { %v1548_v34 = vpop.xlane.xlu1 %1547 }
 0x71d   : > { %2663 = vrcp.f32 %v1548_v34 }
 0x727   : > { %v2664_v35 = vpop.eup %2663 }
 0x728   : > { %v1550_v36 = vmul.f32 %v2664_v35, %v2662_v26 }
 0x72a   : > { %v1551_v37 = vpack.c.bf16 %v1550_v36, %v1550_v36  ;;  %v2300_v36 = vld [vmem:[%s767_s2] ss:$0 sm:$0xff] }
 0x72c   : > { %2401 = vmatmul.mubr.msk.bf16.vlgmr.msra.gmra.mrb[20].mxu1 %vm1341_vm1, %v1551_v37 }
 0x72d   : > { %2440 = vmatprep.mubr.msk.bf16.mxu1 %vm2811_vm0, %v2810_v51  ;;  %2425 = vmatpush3.bf16.msra.mxu1 %v2641_v44 }
 0x72e   : > { %2426 = vmatprep.subr.bf16.mxu1 %v2810_v51 }
 0x731   : > { %2427 = vmatpush3.bf16.msra.mxu1 %v2642_v58 }
 0x732   : > { %2428 = vmatprep.subr.bf16.mxu1 %v2810_v51 }
 0x735   : > { %2429 = vmatpush3.bf16.msra.mxu1 %v2643_v59  ;;  %v2310_v59 = vld [vmem:[%s773_s7] ss:$0 sm:$0xff] }
 0x736   : > { %2430 = vmatprep.subr.bf16.mxu1 %v2810_v51 }
 0x739   : > { %2431 = vmatpush3.bf16.msra.mxu1 %v2644_v60 }
 0x73a   : > { %2432 = vmatprep.subr.bf16.mxu1 %v2810_v51 }
 0x73d   : > { %2433 = vmatpush3.bf16.msra.mxu1 %v2645_v62 }
 0x73e   : > { %2434 = vmatprep.subr.bf16.mxu1 %v2810_v51 }
 0x7ff   : > { %v1593_v39 = vpop.f32.mrb[20].mxu1 }
 0x800   : > { %v1599_v40 = vpack.c.bf16 %v1593_v39, %v1593_v39  ;;  %v2402_v41 = vpop.f32.mrb[21].mxu1 }
 0x801   : > { %v1596_v42 = vpop.f32.mrb[22].mxu1 }
 0x802   : > { %v2403_v43 = vpop.f32.mrb[23].mxu1  ;;  %2421 = vmatmul.mubr.bf16.vlgmr.msra.gmra.mrb[8].mxu0 %v1599_v40 }
 0x803   : > { %2460 = vmatprep.mubr.msk.bf16.mxu0 %vm2811_vm0, %v2810_v51  ;;  %2445 = vmatpush3.bf16.msra.mxu0 %v2649_v1 }
 0x804   : > { %2446 = vmatprep.subr.bf16.mxu0 %v2810_v51 }
 0x807   : > { %2447 = vmatpush3.bf16.msra.mxu0 %v2650_v15 }
 0x808   : > { %2448 = vmatprep.subr.bf16.mxu0 %v2810_v51 }
 0x80b   : > { %2449 = vmatpush3.bf16.msra.mxu0 %v2651_v16 }
 0x80c   : > { %2450 = vmatprep.subr.bf16.mxu0 %v2810_v51 }
 0x80f   : > { %2451 = vmatpush3.bf16.msra.mxu0 %v2652_v17 }
 0x810   : > { %2452 = vmatprep.subr.bf16.mxu0 %v2810_v51 }
 0x813   : > { %2453 = vmatpush3.bf16.msra.mxu0 %v2653_v18 }
 0x814   : > { %2454 = vmatprep.subr.bf16.mxu0 %v2810_v51 }
 0x817   : > { %2455 = vmatpush3.bf16.msra.mxu0 %v2654_v3 }
 0x818   : > { %2456 = vmatprep.subr.bf16.mxu0 %v2810_v51 }
 0x81b   : > { %2457 = vmatpush3.bf16.msra.mxu0 %v2655_v19 }
 0x81c   : > { %2458 = vmatprep.subr.bf16.mxu0 %v2810_v51 }
 0x81f   : > { %2459 = vmatpush3.bf16.msra.mxu0 %v2656_v20 }
 0x8d5   : > { %v1682_v48 = vpop.f32.mrb[8].mxu0 }
 0x8d6   : > { %v1688_v49 = vadd.f32 %v1682_v48, %v1497_v46  ;;  %v2422_v50 = vpop.f32.mrb[9].mxu0 }
 0x8d7   : > { %v1685_v52 = vpop.f32.mrb[10].mxu0 }
 0x8d8   : > { %v1689_v54 = vadd.f32 %v1688_v49, %v3166_v47  ;;  %v2423_v56 = vpop.f32.mrb[11].mxu0  ;;  %v2646_v47 = vld [vmem:[%s3106_s3 + $0x28] sm:$0xff]  }
 0x8d9   : > { %2435 = vmatpush3.bf16.msra.mxu1 %v2646_v47 }
 0x8da   : > { %1692 = vadd.xlane.f32.xlu0 %v1689_v54  ;;  %v1695_v57 = vmul.f32 %v1689_v54, %v1689_v54  ;;  %2436 = vmatprep.subr.bf16.mxu1 %v2810_v51 }
 0x8dc   : > { %1696 = vadd.xlane.f32.xlu1 %v1695_v57  ;;  %v2309_v57 = vld [vmem:[%s770_s4] ss:$0 sm:$0xff] }
 0x8dd   : > { %2437 = vmatpush3.bf16.msra.mxu1 %v2647_v63 }
 0x8de   : > { %2438 = vmatprep.subr.bf16.mxu1 %v2810_v51 }
 0x8e1   : > { %2439 = vmatpush3.bf16.msra.mxu1 %v2648_v0 }
 0x967   : > { %v1693_v2 = vpop.xlane.xlu0 %1692 }
 0x968   : > { %v1694_v4 = vmul.f32 0.03125, %v1693_v2 }
 0x969   : > { %v1697_v5 = vpop.xlane.xlu1 %1696 }
 0x96a   : > { %v1699_v6 = vmul.f32 %v1694_v4, %v1694_v4  ;;  %v1698_v7 = vmul.f32 0.03125, %v1697_v5  ;;  %v1701_v10 = vsub.f32 %v1689_v54, %v1694_v4 }
 0x96c   : > { %v1700_v8 = vsub.f32 %v1698_v7, %v1699_v6 }
 0x96e   : > { %v1702_v9 = vadd.f32 1e-12, %v1700_v8 }
 0x970   : > { %2665 = vrsqrt.f32 %v1702_v9 }
 0x97a   : > { %v2666_v11 = vpop.eup %2665 }
 0x97b   : > { %v1704_v13 = vmul.f32 %v2666_v11, %v1701_v10 }
 0x97d   : > { %v1711_v53 = vmul.f32 %v2289_v12, %v1704_v13 }
 0x97f   : > { %v1718_v55 = vadd.f32 %v2290_v14, %v1711_v53 }
 0x981   : > { %v1719_v61 = vpack.c.bf16 %v1718_v55, %v1718_v55 }
 0x983   : > { %2441 = vmatmul.mubr.bf16.vlgmr.msra.gmra.mrb[24].mxu1 %v1719_v61 }
 0xa56   : > { %v1825_v22 = vpop.f32.mrb[24].mxu1 }
 0xa57   : > { %v1826_v24 = vadd.f32 %v2291_v21, %v1825_v22  ;;  %v2442_v25 = vpop.f32.mrb[25].mxu1 }
 0xa58   : > { %v1828_v26 = vpop.f32.mrb[26].mxu1 }
 0xa59   : > { %v1832_v27 = vmul.f32 0.044715, %v1826_v24  ;;  %v2443_v28 = vpop.f32.mrb[27].mxu1  ;;  %v1831_v51 = vmul.f32 0.5, %v1826_v24 }
 0xa5b   : > { %v1833_v23 = vmul.f32 %v1832_v27, %v1826_v24 }
 0xa5d   : > { %v1834_v29 = vmul.f32 %v1833_v23, %v1826_v24 }
 0xa5f   : > { %v1835_v30 = vadd.f32 %v1834_v29, %v1826_v24 }
 0xa61   : > { %v1836_v31 = vmul.f32 0.7978846, %v1835_v30 }
 0xa63   : > { %2667 = vtanh.f32 %v1836_v31 }
 0xa6d   : > { %v2668_v32 = vpop.eup %2667 }
 0xa6e   : > { %v1838_v33 = vadd.f32 1.0, %v2668_v32 }
 0xa70   : > { %v1839_v34 = vmul.f32 %v1838_v33, %v1831_v51 }
 0xa72   : > { %v1840_v35 = vpack.c.bf16 %v1839_v34, %v1839_v34 }
 0xa74   : > { %2461 = vmatmul.mubr.bf16.vlgmr.msra.gmra.mrb[12].mxu0 %v1840_v35 }
 0xb47   : > { %v1946_v37 = vpop.f32.mrb[12].mxu0 }
 0xb48   : > { %v1947_v38 = vadd.f32 %v2300_v36, %v1946_v37  ;;  %v2462_v39 = vpop.f32.mrb[13].mxu0 }
 0xb49   : > { %v1949_v40 = vpop.f32.mrb[14].mxu0 }
 0xb4a   : > { %v1952_v41 = vadd.f32 %v1947_v38, %v1718_v55  ;;  %v2463_v42 = vpop.f32.mrb[15].mxu0 }
 0xb4c   : > { %1955 = vadd.xlane.f32.xlu0 %v1952_v41  ;;  %v1958_v43 = vmul.f32 %v1952_v41, %v1952_v41 }
 0xb4e   : > { %1959 = vadd.xlane.f32.xlu1 %v1958_v43 }
 0xbd9   : > { %v1956_v44 = vpop.xlane.xlu0 %1955 }
 0xbda   : > { %v1957_v45 = vmul.f32 0.03125, %v1956_v44 }
 0xbdb   : > { %v1960_v46 = vpop.xlane.xlu1 %1959 }
 0xbdc   : > { %v1962_v48 = vmul.f32 %v1957_v45, %v1957_v45  ;;  %v1961_v49 = vmul.f32 0.03125, %v1960_v46  ;;  %v1964_v54 = vsub.f32 %v1952_v41, %v1957_v45 }
 0xbde   : > { %v1963_v50 = vsub.f32 %v1961_v49, %v1962_v48 }
 0xbe0   : > { %v1965_v52 = vadd.f32 1e-12, %v1963_v50 }
 0xbe2   : > { %2669 = vrsqrt.f32 %v1965_v52 }
 0xbec   : > { %v2670_v56 = vpop.eup %2669 }
 0xbed   : > { %v1967_v58 = vmul.f32 %v2670_v56, %v1964_v54 }
 0xbef   : > { %v1974_v60 = vmul.f32 %v2309_v57, %v1967_v58 }
 0xbf1   : > { %v1981_v62 = vadd.f32 %v2310_v59, %v1974_v60 }
 0xbf3   : > { %1982 = vst [vmem:[%s3123_s10] sm:$0xff] %v1981_v62 }
 0xbf4 PF: > { %s3454_s25 = sld [smem:[#allocation12_spill]]  ;;  %s3455_s21 = sld [smem:[#allocation8_spill]] }
 0xbf5   : > { %s3456_s22 = sld [smem:[#allocation9_spill]]  ;;  %s3457_s23 = sld [smem:[#allocation15_spill]] }
 0xbf6   : > { %s3458_s24 = sld [smem:[#allocation10_spill]]  ;;  %s3460_s26 = sld [smem:[#allocation13_spill]] }
 0xbf7   : > { %s3461_s27 = sld [smem:[#allocation14_spill]] }
 0xbfa   : > { %s32_s28 = sadd.s32 1, %s3454_s25   ;;  %s3459_s25 = sld [smem:[#allocation11_spill]] }
 0xbfb   : > { %p29_p8 = scmp.ge.s32.totalorder %s32_s28, 6  }
 0xbfd   :  { %31 = sbr.rel (!%p29_p8) target bundleno = 21 (0x15), region = 177 }
 0xc04   :  { %2002 = vsyncpa [#allocation3], 1 }
 0xc05   :  { %2004 = vsyncpa [#allocation3 + $0x1], 1 }
 0xc06   :  { %2005 = vsyncpa [#allocation5], 1 }
 0xc07   :  { %2007 = vsyncpa [#allocation5 + $0x1], 1 }

</bundles_post_ra>
